<compile_context>
chip_gen: v7x
topology: tpu7x:2x2x1
jax: 0.10.0
libtpu: 0.0.40
codegen_flags: <defaults>
</compile_context>

<pallas_src>
import functools
import math

import jax
import jax.numpy as jnp
from jax import lax
from jax.experimental import pallas as pl
from jax.experimental.pallas import tpu as pltpu


# ----------------------------------------------------------------------------
# Fused kernel: LinearVDP(query) + per-head VDP attention + head merge + residual
# Grid: (batch, query-tile). One batch element / query-row tile per step.
# ----------------------------------------------------------------------------
def decoder_head_vdp_kernel(x_ref, vx_ref, k_ref, vk_ref, v_ref, vv_ref,
                            wt_ref, wt2v_ref, vwt_ref, o_ref, vo_ref,
                            *, inv_rd):
    tq = x_ref.shape[1]
    _, h, skv, dk = k_ref.shape

    x = x_ref[0]          # (TQ, d)
    vx = vx_ref[0]

    wt = wt_ref[...]      # (d, d)  == W.T
    wt2v = wt2v_ref[...]  # (d, d)  == W.T**2 + var_W.T (precomputed in wrapper)
    vwt = vwt_ref[...]    # (d, d)  == var_W.T

    # LinearVDP query projection (fused variance: 2 matmuls instead of 3).
    q = jnp.dot(x, wt, preferred_element_type=jnp.float32)
    vq = (jnp.dot(vx, wt2v, preferred_element_type=jnp.float32)
          + jnp.dot(x * x, vwt, preferred_element_type=jnp.float32))

    # Encoder K/V for this batch element (all heads) -- resident for the step.
    k_all = k_ref[0]      # (h, Skv, dk)
    vk_all = vk_ref[0]
    v_all = v_ref[0]
    vv_all = vv_ref[0]

    # Causal mask using the global query-row offset of this tile.
    q_start = pl.program_id(1) * tq
    row = q_start + lax.broadcasted_iota(jnp.int32, (tq, skv), 0)
    col = lax.broadcasted_iota(jnp.int32, (tq, skv), 1)
    masked = col > row
    neg_inf = jnp.float32(-jnp.inf)

    # 'qd,kd->qk' : contract dim 1 of both operands (no explicit XLU transpose).
    dn = (((1,), (1,)), ((), ()))

    outs = []
    vouts = []
    for hd in range(h):
        lo = hd * dk
        qh = q[:, lo:lo + dk]
        vqh = vq[:, lo:lo + dk]
        kh = k_all[hd]
        vkh = vk_all[hd]
        vh = v_all[hd]
        vvh = vv_all[hd]

        # quadratic_vdp(q, vq, k^T, vk^T) -- fused variance (2 matmuls).
        s = lax.dot_general(qh, kh, dn, preferred_element_type=jnp.float32)
        vs = (lax.dot_general(vqh, kh * kh + vkh, dn,
                              preferred_element_type=jnp.float32)
              + lax.dot_general(qh * qh, vkh, dn,
                                preferred_element_type=jnp.float32))

        # scale by sqrt(d) (mean) and d (variance)
        s = s * inv_rd
        vs = vs * (inv_rd * inv_rd)

        # causal mask on the mean (diagonal always unmasked -> softmax is safe)
        s = jnp.where(masked, neg_inf, s)

        # softmax_vdp (exact division -- matches torch.softmax; the approximate
        # EUP reciprocal introduced ~0.5% error and broke the correctness check)
        m = jnp.max(s, axis=-1, keepdims=True)
        e = jnp.exp(s - m)
        denom = jnp.sum(e, axis=-1, keepdims=True)
        p = e / denom
        grad = p - p * p
        vp = grad * grad * vs

        # quadratic_vdp(p, vp, v, vv) -- fused variance (2 matmuls).
        o = jnp.dot(p, vh, preferred_element_type=jnp.float32)
        vo = (jnp.dot(vp, vh * vh + vvh, preferred_element_type=jnp.float32)
              + jnp.dot(p * p, vvh, preferred_element_type=jnp.float32))

        outs.append(o)
        vouts.append(vo)

    # Head merge (replaces the transpose+reshape epilogue) + residual_vdp('identity');
    # single lane-dense (TQ, d) store per output.
    o_ref[0] = x + jnp.concatenate(outs, axis=-1)
    vo_ref[0] = vx + jnp.concatenate(vouts, axis=-1)


def decoder_head_vdp(x, var_x, k, var_k, v, var_v, Wt, vWt, h, *, tq=None):
    """DecoderHeadVDP forward. Wt / vWt are W.T / var_W.T of the query LinearVDP."""
    B, Sq, d = x.shape
    _, hh, Skv, dk = k.shape
    assert hh == h and h * dk == d
    inv_rd = 1.0 / math.sqrt(d)

    # Weight-derived tensor precomputed once (not per grid step).
    wt2v = Wt * Wt + vWt

    if tq is None:
        tq = 256 if (Sq % 256 == 0) else Sq
    n_q = Sq // tq

    x_spec = pl.BlockSpec((1, tq, d), lambda b, qi: (b, qi, 0))
    kv_spec = pl.BlockSpec((1, h, Skv, dk), lambda b, qi: (b, 0, 0, 0))
    w_spec = pl.BlockSpec((d, d), lambda b, qi: (0, 0))
    out_spec = pl.BlockSpec((1, tq, d), lambda b, qi: (b, qi, 0))

    out_shape = (jax.ShapeDtypeStruct((B, Sq, d), jnp.float32),
                 jax.ShapeDtypeStruct((B, Sq, d), jnp.float32))

    return pl.pallas_call(
        functools.partial(decoder_head_vdp_kernel, inv_rd=inv_rd),
        out_shape=out_shape,
        grid=(B, n_q),
        in_specs=[x_spec, x_spec, kv_spec, kv_spec, kv_spec, kv_spec,
                  w_spec, w_spec, w_spec],
        out_specs=[out_spec, out_spec],
        compiler_params=pltpu.CompilerParams(
            dimension_semantics=("parallel", "parallel"),
            vmem_limit_bytes=48 * 1024 * 1024),
    )(x, var_x, k, var_k, v, var_v, Wt, wt2v, vWt)


# ----------------------------------------------------------------------------
# Pure-JAX reference (same math, literal translation of the PyTorch helpers)
# ----------------------------------------------------------------------------
def reference(x, var_x, k, var_k, v, var_v, wt, vwt, h):
    B, Sq, d = x.shape
    Skv = k.shape[2]
    dk = d // h
    rd = math.sqrt(d)

    q = x @ wt
    vq = var_x @ (wt * wt) + (x * x) @ vwt + var_x @ vwt
    q = q.reshape(B, Sq, h, dk).transpose(0, 2, 1, 3)
    vq = vq.reshape(B, Sq, h, dk).transpose(0, 2, 1, 3)

    kt = jnp.swapaxes(k, 2, 3)
    vkt = jnp.swapaxes(var_k, 2, 3)
    s = q @ kt
    vs = vq @ (kt * kt) + (q * q) @ vkt + vq @ vkt
    s = s / rd
    vs = vs / (rd * rd)

    row = jnp.arange(Sq)[:, None]
    col = jnp.arange(Skv)[None, :]
    s = s + jnp.where(col > row, -jnp.inf, 0.0)

    p = jax.nn.softmax(s, axis=-1)
    grad = p - p * p
    vp = grad * grad * vs

    o = p @ v
    vo = vp @ (v * v) + (p * p) @ var_v + vp @ var_v

    o = o.transpose(0, 2, 1, 3).reshape(B, Sq, d)
    vo = vo.transpose(0, 2, 1, 3).reshape(B, Sq, d)
    return x + o, var_x + vo


if __name__ == "__main__":
    B, Sq, Skv, h, d = 2, 8, 8, 4, 32
    dk = d // h
    var_init = 1e-8

    key = jax.random.PRNGKey(0)
    kx, kvx, kk, kvk, kv, kvv, kw = jax.random.split(key, 7)

    x = jax.random.normal(kx, (B, Sq, d), dtype=jnp.float32)
    var_x = jnp.abs(jax.random.normal(kvx, (B, Sq, d), dtype=jnp.float32)) * 0.01
    k = jax.random.normal(kk, (B, h, Skv, dk), dtype=jnp.float32)
    var_k = jnp.abs(jax.random.normal(kvk, (B, h, Skv, dk), dtype=jnp.float32)) * 0.01
    v = jax.random.normal(kv, (B, h, Skv, dk), dtype=jnp.float32)
    var_v = jnp.abs(jax.random.normal(kvv, (B, h, Skv, dk), dtype=jnp.float32)) * 0.01

    # query LinearVDP parameters: W (d_out, d_in) = (d, d); pass as W^T; var_W = var_init
    W = jax.random.normal(kw, (d, d), dtype=jnp.float32) / math.sqrt(d)
    Wt = W.T
    vWt = jnp.full((d, d), var_init, dtype=jnp.float32)

    out_mu, out_var = decoder_head_vdp(x, var_x, k, var_k, v, var_v, Wt, vWt, h)
    out_mu, out_var = jax.block_until_ready((out_mu, out_var))

    ref_mu, ref_var = reference(x, var_x, k, var_k, v, var_v, Wt, vWt, h)

    # Tolerances sized to absorb the TPU default (reduced-precision) XLA matmul used
    # by the pure-JAX reference; the kernel's f32 MXU matmuls are full precision.
    mu_err = float(jnp.max(jnp.abs(out_mu - ref_mu)))
    var_err = float(jnp.max(jnp.abs(out_var - ref_var)))
    assert jnp.allclose(out_mu, ref_mu, rtol=1e-2, atol=2e-2), mu_err
    assert jnp.allclose(out_var, ref_var, rtol=2e-2, atol=1e-3), var_err
    assert out_mu.shape == (B, Sq, d) and out_var.shape == (B, Sq, d)

    print("KERNEL_OK")
</pallas_src>

<mosaic_0001>
module attributes {stable_mosaic.version = 11 : i64} {
  func.func @decoder_head_vdp_kernel(%arg0: i32, %arg1: i32, %arg2: memref<1x8x32xf32, #tpu.memory_space<vmem>>, %arg3: memref<1x8x32xf32, #tpu.memory_space<vmem>>, %arg4: memref<1x4x8x8xf32, #tpu.memory_space<vmem>>, %arg5: memref<1x4x8x8xf32, #tpu.memory_space<vmem>>, %arg6: memref<1x4x8x8xf32, #tpu.memory_space<vmem>>, %arg7: memref<1x4x8x8xf32, #tpu.memory_space<vmem>>, %arg8: memref<32x32xf32, #tpu.memory_space<vmem>>, %arg9: memref<32x32xf32, #tpu.memory_space<vmem>>, %arg10: memref<32x32xf32, #tpu.memory_space<vmem>>, %arg11: memref<1x8x32xf32, #tpu.memory_space<vmem>>, %arg12: memref<1x8x32xf32, #tpu.memory_space<vmem>>) attributes {dimension_semantics = [#tpu.dimension_semantics<parallel>, #tpu.dimension_semantics<parallel>], iteration_bounds = array<i64: 2, 1>, scalar_prefetch = 0 : i64, scratch_operands = 0 : i64, tpu.core_type = #tpu.core_type<tc>, window_params = [{transform_indices = @transform_0, window_bounds = array<i64: 1, 8, 32>}, {transform_indices = @transform_1, window_bounds = array<i64: 1, 8, 32>}, {transform_indices = @transform_2, window_bounds = array<i64: 1, 4, 8, 8>}, {transform_indices = @transform_3, window_bounds = array<i64: 1, 4, 8, 8>}, {transform_indices = @transform_4, window_bounds = array<i64: 1, 4, 8, 8>}, {transform_indices = @transform_5, window_bounds = array<i64: 1, 4, 8, 8>}, {pipeline_mode = #tpu.pipeline_mode<synchronous>, transform_indices = @transform_6, window_bounds = array<i64: 32, 32>}, {pipeline_mode = #tpu.pipeline_mode<synchronous>, transform_indices = @transform_7, window_bounds = array<i64: 32, 32>}, {pipeline_mode = #tpu.pipeline_mode<synchronous>, transform_indices = @transform_8, window_bounds = array<i64: 32, 32>}, {transform_indices = @transform_9, window_bounds = array<i64: 1, 8, 32>}, {transform_indices = @transform_10, window_bounds = array<i64: 1, 8, 32>}]} {
    %c0 = arith.constant 0 : index
    %c0_0 = arith.constant 0 : index
    %c0_1 = arith.constant 0 : index
    %0 = vector.load %arg2[%c0, %c0_0, %c0_1] : memref<1x8x32xf32, #tpu.memory_space<vmem>>, vector<1x8x32xf32>
    %1 = vector.shape_cast %0 : vector<1x8x32xf32> to vector<8x32xf32>
    %c0_2 = arith.constant 0 : index
    %c0_3 = arith.constant 0 : index
    %c0_4 = arith.constant 0 : index
    %2 = vector.load %arg3[%c0_2, %c0_3, %c0_4] : memref<1x8x32xf32, #tpu.memory_space<vmem>>, vector<1x8x32xf32>
    %3 = vector.shape_cast %2 : vector<1x8x32xf32> to vector<8x32xf32>
    %c0_5 = arith.constant 0 : index
    %c0_6 = arith.constant 0 : index
    %4 = vector.load %arg8[%c0_5, %c0_6] : memref<32x32xf32, #tpu.memory_space<vmem>>, vector<32x32xf32>
    %c0_7 = arith.constant 0 : index
    %c0_8 = arith.constant 0 : index
    %5 = vector.load %arg9[%c0_7, %c0_8] : memref<32x32xf32, #tpu.memory_space<vmem>>, vector<32x32xf32>
    %c0_9 = arith.constant 0 : index
    %c0_10 = arith.constant 0 : index
    %6 = vector.load %arg10[%c0_9, %c0_10] : memref<32x32xf32, #tpu.memory_space<vmem>>, vector<32x32xf32>
    %cst = arith.constant dense<0.000000e+00> : vector<8x32xf32>
    %7 = tpu.matmul %1, %4, %cst {dimension_numbers = #tpu.dot_dimension_numbers<[1], [0], [0], [1], [0, 0, 1, 1], [], []>} : vector<8x32xf32>, vector<32x32xf32>, vector<8x32xf32> -> vector<8x32xf32>
    %cst_11 = arith.constant dense<0.000000e+00> : vector<8x32xf32>
    %8 = tpu.matmul %3, %5, %cst_11 {dimension_numbers = #tpu.dot_dimension_numbers<[1], [0], [0], [1], [0, 0, 1, 1], [], []>} : vector<8x32xf32>, vector<32x32xf32>, vector<8x32xf32> -> vector<8x32xf32>
    %9 = arith.mulf %1, %1 : vector<8x32xf32>
    %cst_12 = arith.constant dense<0.000000e+00> : vector<8x32xf32>
    %10 = tpu.matmul %9, %6, %cst_12 {dimension_numbers = #tpu.dot_dimension_numbers<[1], [0], [0], [1], [0, 0, 1, 1], [], []>} : vector<8x32xf32>, vector<32x32xf32>, vector<8x32xf32> -> vector<8x32xf32>
    %11 = arith.addf %8, %10 : vector<8x32xf32>
    %c0_13 = arith.constant 0 : index
    %c0_14 = arith.constant 0 : index
    %c0_15 = arith.constant 0 : index
    %c0_16 = arith.constant 0 : index
    %12 = vector.load %arg4[%c0_13, %c0_14, %c0_15, %c0_16] : memref<1x4x8x8xf32, #tpu.memory_space<vmem>>, vector<1x4x8x8xf32>
    %13 = vector.shape_cast %12 : vector<1x4x8x8xf32> to vector<4x8x8xf32>
    %c0_17 = arith.constant 0 : index
    %c0_18 = arith.constant 0 : index
    %c0_19 = arith.constant 0 : index
    %c0_20 = arith.constant 0 : index
    %14 = vector.load %arg5[%c0_17, %c0_18, %c0_19, %c0_20] : memref<1x4x8x8xf32, #tpu.memory_space<vmem>>, vector<1x4x8x8xf32>
    %15 = vector.shape_cast %14 : vector<1x4x8x8xf32> to vector<4x8x8xf32>
    %c0_21 = arith.constant 0 : index
    %c0_22 = arith.constant 0 : index
    %c0_23 = arith.constant 0 : index
    %c0_24 = arith.constant 0 : index
    %16 = vector.load %arg6[%c0_21, %c0_22, %c0_23, %c0_24] : memref<1x4x8x8xf32, #tpu.memory_space<vmem>>, vector<1x4x8x8xf32>
    %17 = vector.shape_cast %16 : vector<1x4x8x8xf32> to vector<4x8x8xf32>
    %c0_25 = arith.constant 0 : index
    %c0_26 = arith.constant 0 : index
    %c0_27 = arith.constant 0 : index
    %c0_28 = arith.constant 0 : index
    %18 = vector.load %arg7[%c0_25, %c0_26, %c0_27, %c0_28] : memref<1x4x8x8xf32, #tpu.memory_space<vmem>>, vector<1x4x8x8xf32>
    %19 = vector.shape_cast %18 : vector<1x4x8x8xf32> to vector<4x8x8xf32>
    %c8_i32 = arith.constant 8 : i32
    %20 = arith.muli %arg1, %c8_i32 : i32
    %21 = tpu.iota {dimensions = array<i32: 0>} : vector<8x8xi32>
    %22 = vector.broadcast %20 : i32 to vector<8x8xi32>
    %23 = arith.addi %22, %21 : vector<8x8xi32>
    %24 = tpu.iota {dimensions = array<i32: 1>} : vector<8x8xi32>
    %25 = arith.cmpi sgt, %24, %23 : vector<8x8xi32>
    %26 = vector.extract_strided_slice %7 {offsets = [0, 0], sizes = [8, 8], strides = [1, 1]} : vector<8x32xf32> to vector<8x8xf32>
    %27 = vector.extract_strided_slice %11 {offsets = [0, 0], sizes = [8, 8], strides = [1, 1]} : vector<8x32xf32> to vector<8x8xf32>
    %28 = vector.extract_strided_slice %13 {offsets = [0, 0, 0], sizes = [1, 8, 8], strides = [1, 1, 1]} : vector<4x8x8xf32> to vector<1x8x8xf32>
    %29 = vector.shape_cast %28 : vector<1x8x8xf32> to vector<8x8xf32>
    %30 = vector.extract_strided_slice %15 {offsets = [0, 0, 0], sizes = [1, 8, 8], strides = [1, 1, 1]} : vector<4x8x8xf32> to vector<1x8x8xf32>
    %31 = vector.shape_cast %30 : vector<1x8x8xf32> to vector<8x8xf32>
    %32 = vector.extract_strided_slice %17 {offsets = [0, 0, 0], sizes = [1, 8, 8], strides = [1, 1, 1]} : vector<4x8x8xf32> to vector<1x8x8xf32>
    %33 = vector.shape_cast %32 : vector<1x8x8xf32> to vector<8x8xf32>
    %34 = vector.extract_strided_slice %19 {offsets = [0, 0, 0], sizes = [1, 8, 8], strides = [1, 1, 1]} : vector<4x8x8xf32> to vector<1x8x8xf32>
    %35 = vector.shape_cast %34 : vector<1x8x8xf32> to vector<8x8xf32>
    %cst_29 = arith.constant dense<0.000000e+00> : vector<8x8xf32>
    %36 = tpu.matmul %26, %29, %cst_29 {dimension_numbers = #tpu.dot_dimension_numbers<[1], [1], [0], [0], [0, 0, 1, 0], [], []>} : vector<8x8xf32>, vector<8x8xf32>, vector<8x8xf32> -> vector<8x8xf32>
    %37 = arith.mulf %29, %29 : vector<8x8xf32>
    %38 = arith.addf %37, %31 : vector<8x8xf32>
    %cst_30 = arith.constant dense<0.000000e+00> : vector<8x8xf32>
    %39 = tpu.matmul %27, %38, %cst_30 {dimension_numbers = #tpu.dot_dimension_numbers<[1], [1], [0], [0], [0, 0, 1, 0], [], []>} : vector<8x8xf32>, vector<8x8xf32>, vector<8x8xf32> -> vector<8x8xf32>
    %40 = arith.mulf %26, %26 : vector<8x8xf32>
    %cst_31 = arith.constant dense<0.000000e+00> : vector<8x8xf32>
    %41 = tpu.matmul %40, %31, %cst_31 {dimension_numbers = #tpu.dot_dimension_numbers<[1], [1], [0], [0], [0, 0, 1, 0], [], []>} : vector<8x8xf32>, vector<8x8xf32>, vector<8x8xf32> -> vector<8x8xf32>
    %42 = arith.addf %39, %41 : vector<8x8xf32>
    %cst_32 = arith.constant 0.176776692 : f32
    %43 = vector.broadcast %cst_32 : f32 to vector<8x8xf32>
    %44 = arith.mulf %36, %43 : vector<8x8xf32>
    %cst_33 = arith.constant 3.125000e-02 : f32
    %45 = vector.broadcast %cst_33 : f32 to vector<8x8xf32>
    %46 = arith.mulf %42, %45 : vector<8x8xf32>
    %cst_34 = arith.constant 0xFF800000 : f32
    %47 = vector.broadcast %cst_34 : f32 to vector<8x8xf32>
    %48 = arith.select %25, %47, %44 : vector<8x8xi1>, vector<8x8xf32>
    %cst_35 = arith.constant dense<0xFF800000> : vector<8xf32>
    %49 = vector.multi_reduction <maximumf>, %48, %cst_35 [1] : vector<8x8xf32> to vector<8xf32>
    %50 = vector.shape_cast %49 : vector<8xf32> to vector<8x1xf32>
    %51 = vector.broadcast %50 : vector<8x1xf32> to vector<8x8xf32>
    %52 = arith.subf %48, %51 : vector<8x8xf32>
    %53 = math.exp %52 : vector<8x8xf32>
    %cst_36 = arith.constant dense<0.000000e+00> : vector<8xf32>
    %54 = vector.multi_reduction <add>, %53, %cst_36 [1] : vector<8x8xf32> to vector<8xf32>
    %55 = vector.shape_cast %54 : vector<8xf32> to vector<8x1xf32>
    %56 = vector.broadcast %55 : vector<8x1xf32> to vector<8x8xf32>
    %57 = arith.divf %53, %56 : vector<8x8xf32>
    %58 = arith.mulf %57, %57 : vector<8x8xf32>
    %59 = arith.subf %57, %58 : vector<8x8xf32>
    %60 = arith.mulf %59, %59 : vector<8x8xf32>
    %61 = arith.mulf %60, %46 : vector<8x8xf32>
    %cst_37 = arith.constant dense<0.000000e+00> : vector<8x8xf32>
    %62 = tpu.matmul %57, %33, %cst_37 {dimension_numbers = #tpu.dot_dimension_numbers<[1], [0], [0], [1], [0, 0, 1, 1], [], []>} : vector<8x8xf32>, vector<8x8xf32>, vector<8x8xf32> -> vector<8x8xf32>
    %63 = arith.mulf %33, %33 : vector<8x8xf32>
    %64 = arith.addf %63, %35 : vector<8x8xf32>
    %cst_38 = arith.constant dense<0.000000e+00> : vector<8x8xf32>
    %65 = tpu.matmul %61, %64, %cst_38 {dimension_numbers = #tpu.dot_dimension_numbers<[1], [0], [0], [1], [0, 0, 1, 1], [], []>} : vector<8x8xf32>, vector<8x8xf32>, vector<8x8xf32> -> vector<8x8xf32>
    %66 = arith.mulf %57, %57 : vector<8x8xf32>
    %cst_39 = arith.constant dense<0.000000e+00> : vector<8x8xf32>
    %67 = tpu.matmul %66, %35, %cst_39 {dimension_numbers = #tpu.dot_dimension_numbers<[1], [0], [0], [1], [0, 0, 1, 1], [], []>} : vector<8x8xf32>, vector<8x8xf32>, vector<8x8xf32> -> vector<8x8xf32>
    %68 = arith.addf %65, %67 : vector<8x8xf32>
    %69 = vector.extract_strided_slice %7 {offsets = [0, 8], sizes = [8, 8], strides = [1, 1]} : vector<8x32xf32> to vector<8x8xf32>
    %70 = vector.extract_strided_slice %11 {offsets = [0, 8], sizes = [8, 8], strides = [1, 1]} : vector<8x32xf32> to vector<8x8xf32>
    %71 = vector.extract_strided_slice %13 {offsets = [1, 0, 0], sizes = [1, 8, 8], strides = [1, 1, 1]} : vector<4x8x8xf32> to vector<1x8x8xf32>
    %72 = vector.shape_cast %71 : vector<1x8x8xf32> to vector<8x8xf32>
    %73 = vector.extract_strided_slice %15 {offsets = [1, 0, 0], sizes = [1, 8, 8], strides = [1, 1, 1]} : vector<4x8x8xf32> to vector<1x8x8xf32>
    %74 = vector.shape_cast %73 : vector<1x8x8xf32> to vector<8x8xf32>
    %75 = vector.extract_strided_slice %17 {offsets = [1, 0, 0], sizes = [1, 8, 8], strides = [1, 1, 1]} : vector<4x8x8xf32> to vector<1x8x8xf32>
    %76 = vector.shape_cast %75 : vector<1x8x8xf32> to vector<8x8xf32>
    %77 = vector.extract_strided_slice %19 {offsets = [1, 0, 0], sizes = [1, 8, 8], strides = [1, 1, 1]} : vector<4x8x8xf32> to vector<1x8x8xf32>
    %78 = vector.shape_cast %77 : vector<1x8x8xf32> to vector<8x8xf32>
    %cst_40 = arith.constant dense<0.000000e+00> : vector<8x8xf32>
    %79 = tpu.matmul %69, %72, %cst_40 {dimension_numbers = #tpu.dot_dimension_numbers<[1], [1], [0], [0], [0, 0, 1, 0], [], []>} : vector<8x8xf32>, vector<8x8xf32>, vector<8x8xf32> -> vector<8x8xf32>
    %80 = arith.mulf %72, %72 : vector<8x8xf32>
    %81 = arith.addf %80, %74 : vector<8x8xf32>
    %cst_41 = arith.constant dense<0.000000e+00> : vector<8x8xf32>
    %82 = tpu.matmul %70, %81, %cst_41 {dimension_numbers = #tpu.dot_dimension_numbers<[1], [1], [0], [0], [0, 0, 1, 0], [], []>} : vector<8x8xf32>, vector<8x8xf32>, vector<8x8xf32> -> vector<8x8xf32>
    %83 = arith.mulf %69, %69 : vector<8x8xf32>
    %cst_42 = arith.constant dense<0.000000e+00> : vector<8x8xf32>
    %84 = tpu.matmul %83, %74, %cst_42 {dimension_numbers = #tpu.dot_dimension_numbers<[1], [1], [0], [0], [0, 0, 1, 0], [], []>} : vector<8x8xf32>, vector<8x8xf32>, vector<8x8xf32> -> vector<8x8xf32>
    %85 = arith.addf %82, %84 : vector<8x8xf32>
    %cst_43 = arith.constant 0.176776692 : f32
    %86 = vector.broadcast %cst_43 : f32 to vector<8x8xf32>
    %87 = arith.mulf %79, %86 : vector<8x8xf32>
    %cst_44 = arith.constant 3.125000e-02 : f32
    %88 = vector.broadcast %cst_44 : f32 to vector<8x8xf32>
    %89 = arith.mulf %85, %88 : vector<8x8xf32>
    %cst_45 = arith.constant 0xFF800000 : f32
    %90 = vector.broadcast %cst_45 : f32 to vector<8x8xf32>
    %91 = arith.select %25, %90, %87 : vector<8x8xi1>, vector<8x8xf32>
    %cst_46 = arith.constant dense<0xFF800000> : vector<8xf32>
    %92 = vector.multi_reduction <maximumf>, %91, %cst_46 [1] : vector<8x8xf32> to vector<8xf32>
    %93 = vector.shape_cast %92 : vector<8xf32> to vector<8x1xf32>
    %94 = vector.broadcast %93 : vector<8x1xf32> to vector<8x8xf32>
    %95 = arith.subf %91, %94 : vector<8x8xf32>
    %96 = math.exp %95 : vector<8x8xf32>
    %cst_47 = arith.constant dense<0.000000e+00> : vector<8xf32>
    %97 = vector.multi_reduction <add>, %96, %cst_47 [1] : vector<8x8xf32> to vector<8xf32>
    %98 = vector.shape_cast %97 : vector<8xf32> to vector<8x1xf32>
    %99 = vector.broadcast %98 : vector<8x1xf32> to vector<8x8xf32>
    %100 = arith.divf %96, %99 : vector<8x8xf32>
    %101 = arith.mulf %100, %100 : vector<8x8xf32>
    %102 = arith.subf %100, %101 : vector<8x8xf32>
    %103 = arith.mulf %102, %102 : vector<8x8xf32>
    %104 = arith.mulf %103, %89 : vector<8x8xf32>
    %cst_48 = arith.constant dense<0.000000e+00> : vector<8x8xf32>
    %105 = tpu.matmul %100, %76, %cst_48 {dimension_numbers = #tpu.dot_dimension_numbers<[1], [0], [0], [1], [0, 0, 1, 1], [], []>} : vector<8x8xf32>, vector<8x8xf32>, vector<8x8xf32> -> vector<8x8xf32>
    %106 = arith.mulf %76, %76 : vector<8x8xf32>
    %107 = arith.addf %106, %78 : vector<8x8xf32>
    %cst_49 = arith.constant dense<0.000000e+00> : vector<8x8xf32>
    %108 = tpu.matmul %104, %107, %cst_49 {dimension_numbers = #tpu.dot_dimension_numbers<[1], [0], [0], [1], [0, 0, 1, 1], [], []>} : vector<8x8xf32>, vector<8x8xf32>, vector<8x8xf32> -> vector<8x8xf32>
    %109 = arith.mulf %100, %100 : vector<8x8xf32>
    %cst_50 = arith.constant dense<0.000000e+00> : vector<8x8xf32>
    %110 = tpu.matmul %109, %78, %cst_50 {dimension_numbers = #tpu.dot_dimension_numbers<[1], [0], [0], [1], [0, 0, 1, 1], [], []>} : vector<8x8xf32>, vector<8x8xf32>, vector<8x8xf32> -> vector<8x8xf32>
    %111 = arith.addf %108, %110 : vector<8x8xf32>
    %112 = vector.extract_strided_slice %7 {offsets = [0, 16], sizes = [8, 8], strides = [1, 1]} : vector<8x32xf32> to vector<8x8xf32>
    %113 = vector.extract_strided_slice %11 {offsets = [0, 16], sizes = [8, 8], strides = [1, 1]} : vector<8x32xf32> to vector<8x8xf32>
    %114 = vector.extract_strided_slice %13 {offsets = [2, 0, 0], sizes = [1, 8, 8], strides = [1, 1, 1]} : vector<4x8x8xf32> to vector<1x8x8xf32>
    %115 = vector.shape_cast %114 : vector<1x8x8xf32> to vector<8x8xf32>
    %116 = vector.extract_strided_slice %15 {offsets = [2, 0, 0], sizes = [1, 8, 8], strides = [1, 1, 1]} : vector<4x8x8xf32> to vector<1x8x8xf32>
    %117 = vector.shape_cast %116 : vector<1x8x8xf32> to vector<8x8xf32>
    %118 = vector.extract_strided_slice %17 {offsets = [2, 0, 0], sizes = [1, 8, 8], strides = [1, 1, 1]} : vector<4x8x8xf32> to vector<1x8x8xf32>
    %119 = vector.shape_cast %118 : vector<1x8x8xf32> to vector<8x8xf32>
    %120 = vector.extract_strided_slice %19 {offsets = [2, 0, 0], sizes = [1, 8, 8], strides = [1, 1, 1]} : vector<4x8x8xf32> to vector<1x8x8xf32>
    %121 = vector.shape_cast %120 : vector<1x8x8xf32> to vector<8x8xf32>
    %cst_51 = arith.constant dense<0.000000e+00> : vector<8x8xf32>
    %122 = tpu.matmul %112, %115, %cst_51 {dimension_numbers = #tpu.dot_dimension_numbers<[1], [1], [0], [0], [0, 0, 1, 0], [], []>} : vector<8x8xf32>, vector<8x8xf32>, vector<8x8xf32> -> vector<8x8xf32>
    %123 = arith.mulf %115, %115 : vector<8x8xf32>
    %124 = arith.addf %123, %117 : vector<8x8xf32>
    %cst_52 = arith.constant dense<0.000000e+00> : vector<8x8xf32>
    %125 = tpu.matmul %113, %124, %cst_52 {dimension_numbers = #tpu.dot_dimension_numbers<[1], [1], [0], [0], [0, 0, 1, 0], [], []>} : vector<8x8xf32>, vector<8x8xf32>, vector<8x8xf32> -> vector<8x8xf32>
    %126 = arith.mulf %112, %112 : vector<8x8xf32>
    %cst_53 = arith.constant dense<0.000000e+00> : vector<8x8xf32>
    %127 = tpu.matmul %126, %117, %cst_53 {dimension_numbers = #tpu.dot_dimension_numbers<[1], [1], [0], [0], [0, 0, 1, 0], [], []>} : vector<8x8xf32>, vector<8x8xf32>, vector<8x8xf32> -> vector<8x8xf32>
    %128 = arith.addf %125, %127 : vector<8x8xf32>
    %cst_54 = arith.constant 0.176776692 : f32
    %129 = vector.broadcast %cst_54 : f32 to vector<8x8xf32>
    %130 = arith.mulf %122, %129 : vector<8x8xf32>
    %cst_55 = arith.constant 3.125000e-02 : f32
    %131 = vector.broadcast %cst_55 : f32 to vector<8x8xf32>
    %132 = arith.mulf %128, %131 : vector<8x8xf32>
    %cst_56 = arith.constant 0xFF800000 : f32
    %133 = vector.broadcast %cst_56 : f32 to vector<8x8xf32>
    %134 = arith.select %25, %133, %130 : vector<8x8xi1>, vector<8x8xf32>
    %cst_57 = arith.constant dense<0xFF800000> : vector<8xf32>
    %135 = vector.multi_reduction <maximumf>, %134, %cst_57 [1] : vector<8x8xf32> to vector<8xf32>
    %136 = vector.shape_cast %135 : vector<8xf32> to vector<8x1xf32>
    %137 = vector.broadcast %136 : vector<8x1xf32> to vector<8x8xf32>
    %138 = arith.subf %134, %137 : vector<8x8xf32>
    %139 = math.exp %138 : vector<8x8xf32>
    %cst_58 = arith.constant dense<0.000000e+00> : vector<8xf32>
    %140 = vector.multi_reduction <add>, %139, %cst_58 [1] : vector<8x8xf32> to vector<8xf32>
    %141 = vector.shape_cast %140 : vector<8xf32> to vector<8x1xf32>
    %142 = vector.broadcast %141 : vector<8x1xf32> to vector<8x8xf32>
    %143 = arith.divf %139, %142 : vector<8x8xf32>
    %144 = arith.mulf %143, %143 : vector<8x8xf32>
    %145 = arith.subf %143, %144 : vector<8x8xf32>
    %146 = arith.mulf %145, %145 : vector<8x8xf32>
    %147 = arith.mulf %146, %132 : vector<8x8xf32>
    %cst_59 = arith.constant dense<0.000000e+00> : vector<8x8xf32>
    %148 = tpu.matmul %143, %119, %cst_59 {dimension_numbers = #tpu.dot_dimension_numbers<[1], [0], [0], [1], [0, 0, 1, 1], [], []>} : vector<8x8xf32>, vector<8x8xf32>, vector<8x8xf32> -> vector<8x8xf32>
    %149 = arith.mulf %119, %119 : vector<8x8xf32>
    %150 = arith.addf %149, %121 : vector<8x8xf32>
    %cst_60 = arith.constant dense<0.000000e+00> : vector<8x8xf32>
    %151 = tpu.matmul %147, %150, %cst_60 {dimension_numbers = #tpu.dot_dimension_numbers<[1], [0], [0], [1], [0, 0, 1, 1], [], []>} : vector<8x8xf32>, vector<8x8xf32>, vector<8x8xf32> -> vector<8x8xf32>
    %152 = arith.mulf %143, %143 : vector<8x8xf32>
    %cst_61 = arith.constant dense<0.000000e+00> : vector<8x8xf32>
    %153 = tpu.matmul %152, %121, %cst_61 {dimension_numbers = #tpu.dot_dimension_numbers<[1], [0], [0], [1], [0, 0, 1, 1], [], []>} : vector<8x8xf32>, vector<8x8xf32>, vector<8x8xf32> -> vector<8x8xf32>
    %154 = arith.addf %151, %153 : vector<8x8xf32>
    %155 = vector.extract_strided_slice %7 {offsets = [0, 24], sizes = [8, 8], strides = [1, 1]} : vector<8x32xf32> to vector<8x8xf32>
    %156 = vector.extract_strided_slice %11 {offsets = [0, 24], sizes = [8, 8], strides = [1, 1]} : vector<8x32xf32> to vector<8x8xf32>
    %157 = vector.extract_strided_slice %13 {offsets = [3, 0, 0], sizes = [1, 8, 8], strides = [1, 1, 1]} : vector<4x8x8xf32> to vector<1x8x8xf32>
    %158 = vector.shape_cast %157 : vector<1x8x8xf32> to vector<8x8xf32>
    %159 = vector.extract_strided_slice %15 {offsets = [3, 0, 0], sizes = [1, 8, 8], strides = [1, 1, 1]} : vector<4x8x8xf32> to vector<1x8x8xf32>
    %160 = vector.shape_cast %159 : vector<1x8x8xf32> to vector<8x8xf32>
    %161 = vector.extract_strided_slice %17 {offsets = [3, 0, 0], sizes = [1, 8, 8], strides = [1, 1, 1]} : vector<4x8x8xf32> to vector<1x8x8xf32>
    %162 = vector.shape_cast %161 : vector<1x8x8xf32> to vector<8x8xf32>
    %163 = vector.extract_strided_slice %19 {offsets = [3, 0, 0], sizes = [1, 8, 8], strides = [1, 1, 1]} : vector<4x8x8xf32> to vector<1x8x8xf32>
    %164 = vector.shape_cast %163 : vector<1x8x8xf32> to vector<8x8xf32>
    %cst_62 = arith.constant dense<0.000000e+00> : vector<8x8xf32>
    %165 = tpu.matmul %155, %158, %cst_62 {dimension_numbers = #tpu.dot_dimension_numbers<[1], [1], [0], [0], [0, 0, 1, 0], [], []>} : vector<8x8xf32>, vector<8x8xf32>, vector<8x8xf32> -> vector<8x8xf32>
    %166 = arith.mulf %158, %158 : vector<8x8xf32>
    %167 = arith.addf %166, %160 : vector<8x8xf32>
    %cst_63 = arith.constant dense<0.000000e+00> : vector<8x8xf32>
    %168 = tpu.matmul %156, %167, %cst_63 {dimension_numbers = #tpu.dot_dimension_numbers<[1], [1], [0], [0], [0, 0, 1, 0], [], []>} : vector<8x8xf32>, vector<8x8xf32>, vector<8x8xf32> -> vector<8x8xf32>
    %169 = arith.mulf %155, %155 : vector<8x8xf32>
    %cst_64 = arith.constant dense<0.000000e+00> : vector<8x8xf32>
    %170 = tpu.matmul %169, %160, %cst_64 {dimension_numbers = #tpu.dot_dimension_numbers<[1], [1], [0], [0], [0, 0, 1, 0], [], []>} : vector<8x8xf32>, vector<8x8xf32>, vector<8x8xf32> -> vector<8x8xf32>
    %171 = arith.addf %168, %170 : vector<8x8xf32>
    %cst_65 = arith.constant 0.176776692 : f32
    %172 = vector.broadcast %cst_65 : f32 to vector<8x8xf32>
    %173 = arith.mulf %165, %172 : vector<8x8xf32>
    %cst_66 = arith.constant 3.125000e-02 : f32
    %174 = vector.broadcast %cst_66 : f32 to vector<8x8xf32>
    %175 = arith.mulf %171, %174 : vector<8x8xf32>
    %cst_67 = arith.constant 0xFF800000 : f32
    %176 = vector.broadcast %cst_67 : f32 to vector<8x8xf32>
    %177 = arith.select %25, %176, %173 : vector<8x8xi1>, vector<8x8xf32>
    %cst_68 = arith.constant dense<0xFF800000> : vector<8xf32>
    %178 = vector.multi_reduction <maximumf>, %177, %cst_68 [1] : vector<8x8xf32> to vector<8xf32>
    %179 = vector.shape_cast %178 : vector<8xf32> to vector<8x1xf32>
    %180 = vector.broadcast %179 : vector<8x1xf32> to vector<8x8xf32>
    %181 = arith.subf %177, %180 : vector<8x8xf32>
    %182 = math.exp %181 : vector<8x8xf32>
    %cst_69 = arith.constant dense<0.000000e+00> : vector<8xf32>
    %183 = vector.multi_reduction <add>, %182, %cst_69 [1] : vector<8x8xf32> to vector<8xf32>
    %184 = vector.shape_cast %183 : vector<8xf32> to vector<8x1xf32>
    %185 = vector.broadcast %184 : vector<8x1xf32> to vector<8x8xf32>
    %186 = arith.divf %182, %185 : vector<8x8xf32>
    %187 = arith.mulf %186, %186 : vector<8x8xf32>
    %188 = arith.subf %186, %187 : vector<8x8xf32>
    %189 = arith.mulf %188, %188 : vector<8x8xf32>
    %190 = arith.mulf %189, %175 : vector<8x8xf32>
    %cst_70 = arith.constant dense<0.000000e+00> : vector<8x8xf32>
    %191 = tpu.matmul %186, %162, %cst_70 {dimension_numbers = #tpu.dot_dimension_numbers<[1], [0], [0], [1], [0, 0, 1, 1], [], []>} : vector<8x8xf32>, vector<8x8xf32>, vector<8x8xf32> -> vector<8x8xf32>
    %192 = arith.mulf %162, %162 : vector<8x8xf32>
    %193 = arith.addf %192, %164 : vector<8x8xf32>
    %cst_71 = arith.constant dense<0.000000e+00> : vector<8x8xf32>
    %194 = tpu.matmul %190, %193, %cst_71 {dimension_numbers = #tpu.dot_dimension_numbers<[1], [0], [0], [1], [0, 0, 1, 1], [], []>} : vector<8x8xf32>, vector<8x8xf32>, vector<8x8xf32> -> vector<8x8xf32>
    %195 = arith.mulf %186, %186 : vector<8x8xf32>
    %cst_72 = arith.constant dense<0.000000e+00> : vector<8x8xf32>
    %196 = tpu.matmul %195, %164, %cst_72 {dimension_numbers = #tpu.dot_dimension_numbers<[1], [0], [0], [1], [0, 0, 1, 1], [], []>} : vector<8x8xf32>, vector<8x8xf32>, vector<8x8xf32> -> vector<8x8xf32>
    %197 = arith.addf %194, %196 : vector<8x8xf32>
    %198 = tpu.concatenate %62, %105, %148, %191 in 1 : vector<8x8xf32>, vector<8x8xf32>, vector<8x8xf32>, vector<8x8xf32> -> vector<8x32xf32>
    %199 = arith.addf %1, %198 : vector<8x32xf32>
    %c0_73 = arith.constant 0 : index
    %c0_74 = arith.constant 0 : index
    %c0_75 = arith.constant 0 : index
    %200 = vector.load %arg11[%c0_73, %c0_74, %c0_75] : memref<1x8x32xf32, #tpu.memory_space<vmem>>, vector<1x8x32xf32>
    %201 = vector.shape_cast %200 : vector<1x8x32xf32> to vector<8x32xf32>
    %202 = vector.shape_cast %199 : vector<8x32xf32> to vector<1x8x32xf32>
    tpu.vector_store %arg11[%c0_73, %c0_74, %c0_75], %202 {strides = array<i32>} : memref<1x8x32xf32, #tpu.memory_space<vmem>>, vector<1x8x32xf32>,
    %203 = tpu.concatenate %68, %111, %154, %197 in 1 : vector<8x8xf32>, vector<8x8xf32>, vector<8x8xf32>, vector<8x8xf32> -> vector<8x32xf32>
    %204 = arith.addf %3, %203 : vector<8x32xf32>
    %c0_76 = arith.constant 0 : index
    %c0_77 = arith.constant 0 : index
    %c0_78 = arith.constant 0 : index
    %205 = vector.load %arg12[%c0_76, %c0_77, %c0_78] : memref<1x8x32xf32, #tpu.memory_space<vmem>>, vector<1x8x32xf32>
    %206 = vector.shape_cast %205 : vector<1x8x32xf32> to vector<8x32xf32>
    %207 = vector.shape_cast %204 : vector<8x32xf32> to vector<1x8x32xf32>
    tpu.vector_store %arg12[%c0_76, %c0_77, %c0_78], %207 {strides = array<i32>} : memref<1x8x32xf32, #tpu.memory_space<vmem>>, vector<1x8x32xf32>,
    return
  }
  func.func @transform_0(%arg0: i32, %arg1: i32) -> (i32, i32, i32) {
    %c0_i32 = arith.constant 0 : i32
    %c0_i32_0 = arith.constant 0 : i32
    return %arg0, %arg1, %c0_i32 : i32, i32, i32
  }
  func.func @transform_1(%arg0: i32, %arg1: i32) -> (i32, i32, i32) {
    %c0_i32 = arith.constant 0 : i32
    %c0_i32_0 = arith.constant 0 : i32
    return %arg0, %arg1, %c0_i32 : i32, i32, i32
  }
  func.func @transform_2(%arg0: i32, %arg1: i32) -> (i32, i32, i32, i32) {
    %c0_i32 = arith.constant 0 : i32
    %c0_i32_0 = arith.constant 0 : i32
    %c0_i32_1 = arith.constant 0 : i32
    %c0_i32_2 = arith.constant 0 : i32
    return %arg0, %c0_i32, %c0_i32_0, %c0_i32_1 : i32, i32, i32, i32
  }
  func.func @transform_3(%arg0: i32, %arg1: i32) -> (i32, i32, i32, i32) {
    %c0_i32 = arith.constant 0 : i32
    %c0_i32_0 = arith.constant 0 : i32
    %c0_i32_1 = arith.constant 0 : i32
    %c0_i32_2 = arith.constant 0 : i32
    return %arg0, %c0_i32, %c0_i32_0, %c0_i32_1 : i32, i32, i32, i32
  }
  func.func @transform_4(%arg0: i32, %arg1: i32) -> (i32, i32, i32, i32) {
    %c0_i32 = arith.constant 0 : i32
    %c0_i32_0 = arith.constant 0 : i32
    %c0_i32_1 = arith.constant 0 : i32
    %c0_i32_2 = arith.constant 0 : i32
    return %arg0, %c0_i32, %c0_i32_0, %c0_i32_1 : i32, i32, i32, i32
  }
  func.func @transform_5(%arg0: i32, %arg1: i32) -> (i32, i32, i32, i32) {
    %c0_i32 = arith.constant 0 : i32
    %c0_i32_0 = arith.constant 0 : i32
    %c0_i32_1 = arith.constant 0 : i32
    %c0_i32_2 = arith.constant 0 : i32
    return %arg0, %c0_i32, %c0_i32_0, %c0_i32_1 : i32, i32, i32, i32
  }
  func.func @transform_6(%arg0: i32, %arg1: i32) -> (i32, i32) {
    %c0_i32 = arith.constant 0 : i32
    %c0_i32_0 = arith.constant 0 : i32
    %c0_i32_1 = arith.constant 0 : i32
    return %c0_i32, %c0_i32_0 : i32, i32
  }
  func.func @transform_7(%arg0: i32, %arg1: i32) -> (i32, i32) {
    %c0_i32 = arith.constant 0 : i32
    %c0_i32_0 = arith.constant 0 : i32
    %c0_i32_1 = arith.constant 0 : i32
    return %c0_i32, %c0_i32_0 : i32, i32
  }
  func.func @transform_8(%arg0: i32, %arg1: i32) -> (i32, i32) {
    %c0_i32 = arith.constant 0 : i32
    %c0_i32_0 = arith.constant 0 : i32
    %c0_i32_1 = arith.constant 0 : i32
    return %c0_i32, %c0_i32_0 : i32, i32
  }
  func.func @transform_9(%arg0: i32, %arg1: i32) -> (i32, i32, i32) {
    %c0_i32 = arith.constant 0 : i32
    %c0_i32_0 = arith.constant 0 : i32
    return %arg0, %arg1, %c0_i32 : i32, i32, i32
  }
  func.func @transform_10(%arg0: i32, %arg1: i32) -> (i32, i32, i32) {
    %c0_i32 = arith.constant 0 : i32
    %c0_i32_0 = arith.constant 0 : i32
    return %arg0, %arg1, %c0_i32 : i32, i32, i32
  }
}

</mosaic_0001>

<bundles_post_ra>
// kernel: tpu_custom_call.1
= control target key start
LH: loop header
LB: loop body
LE: loop exit
PB: predicated region body
PF: predicated region fallthrough
CT: control target
= control target key end

     0   :  { %s4794_s0 = inlined_call_operand.hbm [shape: f32[2,8,32], index: 0, kind: input, shape index: {}]   ;;  %s4795_s1 = inlined_call_operand.hbm [shape: f32[2,8,32], index: 1, kind: input, shape index: {}]   ;;  %s4796_s2 = inlined_call_operand.hbm [shape: f32[2,4,8,8], index: 2, kind: input, shape index: {}]   ;;  %s4797_s3 = inlined_call_operand.hbm [shape: f32[2,4,8,8], index: 3, kind: input, shape index: {}]   ;;  %s4798_s4 = inlined_call_operand.hbm [shape: f32[2,4,8,8], index: 4, kind: input, shape index: {}]   ;;  %s4799_s5 = inlined_call_operand.hbm [shape: f32[2,4,8,8], index: 5, kind: input, shape index: {}]   ;;  %s4800_s6 = inlined_call_operand.hbm [shape: f32[32,32], index: 6, kind: input, shape index: {}]   ;;  %s4801_s7 = inlined_call_operand.hbm [shape: f32[32,32], index: 7, kind: input, shape index: {}]   ;;  %s4802_s8 = inlined_call_operand.hbm [shape: f32[32,32], index: 8, kind: input, shape index: {}]   ;;  %s4803_s9 = inlined_call_operand.hbm [shape: f32[2,8,32], index: 9, kind: output, shape index: {0}]   ;;  %s4804_s10 = inlined_call_operand.hbm [shape: f32[2,8,32], index: 10, kind: output, shape index: {1}]  }
   0x1   :  { %4833 = sst [smem:[#allocation37_spill]] %s4795_s1 }
   0x2   :  { %4834 = sst [smem:[#allocation38_spill]] %s4797_s3 }
   0x3   :  { %4835 = sst [smem:[#allocation39_spill]] %s4800_s6 }
   0x4   :  { %4836 = sst [smem:[#allocation40_spill]] %s4801_s7 }
   0x5   :  { %4837 = sst [smem:[#allocation41_spill]] %s4803_s9 }
   0x6   :  { %4838 = sst [smem:[#allocation42_spill]] %s4804_s10 }
   0x7   :  { %16 = vsyncpa [#allocation3], 0 }
   0x8   :  { %18 = vsyncpa [#allocation3 + $0x1], 0 }
   0x9   :  { %19 = vsyncpa [#allocation6], 0 }
   0xa   :  { %21 = vsyncpa [#allocation6 + $0x1], 0 }
   0xb   :  { %22 = vsyncpa [#allocation9], 0 }
   0xc   :  { %24 = vsyncpa [#allocation9 + $0x1], 0 }
   0xd   :  { %25 = vsyncpa [#allocation12], 0 }
   0xe   :  { %27 = vsyncpa [#allocation12 + $0x1], 0 }
   0xf   :  { %28 = vsyncpa [#allocation15], 0 }
  0x10   :  { %29 = vsyncpa [#allocation4], 0 }
  0x11   :  { %31 = vsyncpa [#allocation4 + $0x1], 0 }
  0x12   :  { %32 = vsyncpa [#allocation19], 0 }
  0x13   :  { %34 = vsyncpa [#allocation19 + $0x1], 0  ;;  %s4072_s13 = smov 0   ;;  %s4074_s14 = smov 0  }
  0x14   :  { %s4076_s15 = smov 0   ;;  %s4078_s16 = smov 0  }
  0x15   :  { %s4080_s17 = smov 0   ;;  %s4082_s18 = smov 0  }
  0x16 LB: > { %4839 = sst [smem:[#allocation28_spill]] %s3973_s13  ;;  %s4103_s19 = sadd.s32 4294967295, %s3993_s18   ;;  %s3993_s18 = sphi %s4082_s18, %s40_s18   ;;  %s3989_s17 = sphi %s4080_s17, %s4895_s17   ;;  %s3985_s16 = sphi %s4078_s16, %s4894_s16   ;;  %s3981_s15 = sphi %s4076_s15, %s4890_s15   ;;  %s3977_s14 = sphi %s4074_s14, %s4893_s14   ;;  %s3973_s13 = sphi %s4072_s13, %s4892_s13  }
  0x17   : > { %4840 = sst [smem:[#allocation29_spill]] %s3981_s15  ;;  %s3110_s20 = sadd.s32 4294967294, %s3993_s18  }
  0x18   : > { %4841 = sst [smem:[#allocation30_spill]] %s3985_s16  ;;  %p74_p0 = scmp.ne.s32.totalorder %s3977_s14, %s3973_s13 }
  0x19   : > { %4842 = sst [smem:[#allocation31_spill]] %s3993_s18  ;;  %p4806_p1 = scmp.eq.s32.totalorder %s4103_s19, 0 }
  0x1a   : > { %4843 = sst [smem:[#allocation32_spill]] %s4103_s19  ;;  %p301_p3 = scmp.eq.s32.totalorder %s3110_s20, 1 }
  0x1b   : > { %p4112_p4 = por %p4806_p1, %p74_p0  ;;  %p3111_p5 = scmp.ge.s32.totalorder %s3993_s18, 1 }
  0x1c   : > { %p4117_p6 = por %p301_p3, %p74_p0  ;;  %p336_p7 = scmp.lt.s32.totalorder %s3993_s18, 3 }
  0x1d   : > { %s4844_s21 = scalar_select %p4112_p4, 1, 0 }
  0x1e   : > { %s4845_s22 = scalar_select %p4117_p6, 1, 0 }
  0x1f   : > { %p4122_p8 = pnand %p3111_p5, %p336_p7  ;;  %s3995_s24 = smov [#allocation13]  }
  0x20   : > { %4846 = sst [smem:[#allocation33_spill]] %s4845_s22  ;;  %s348_s25 = sshll.u32 %s3995_s24, 4  ;;  %s4126_s25 = int_to_ptr.vmem [resolvable:$true] %s348_s25 }
  0x21   : > { %s4847_s23 = scalar_select %p4122_p8, 1, 0 }
  0x22   : > { %p3473_p9 = pneg %p4122_p8  ;;  %s3996_s27 = smov [#allocation14]  }
  0x23   : > { %s361_s28 = sshll.u32 %s3996_s27, 4  ;;  %s4849_s6 = sld [smem:[#allocation39_spill]]  ;;  %s4137_s28 = int_to_ptr.vmem [resolvable:$true] %s361_s28 }
  0x24   : > { %p4133_p11 = pnand %p3473_p9, %p4806_p1 }
  0x26   : > { %s4848_s26 = scalar_select %p4133_p11, 1, 0 }
  0x27   : > { %p4147_p13 = pneg %p4133_p11 }
  0x29   : > { %s3595_s11 = scalar_lea.hbm %s4849_s6, 512 }
  0x2a   : > { %p3596_p12 = scmp.ne.s32.totalorder %s4849_s6, %s3595_s11  ;;  %p3602_p5 = scmp.lt.u32.totalorder %s3595_s11, %s4849_s6 }
  0x2b   : > { %s4850_s24 = scalar_select %p4147_p13, 1, 0 }
  0x2c   : > { %p3598_p0 = pnand %p4147_p13, %p3596_p12 }
  0x2e   : > { %p3599_p3 = pneg %p3598_p0 }
  0x30   : > { %p3604_p7 = pnand %p3602_p5, %p3599_p3 }
  0x32   : > { %3607 = shalt.err (!%p3604_p7)
}
  0x33   : > { %s3608_s29 = scalar_lea.vmem %s4126_s25, 512  ;;  %p3616_p2 = scmp.lt.s32.totalorder %s4126_s25, %s4126_s25 }
  0x34   : > { %p3609_p9 = scmp.ne.s32.totalorder %s4126_s25, %s3608_s29  ;;  %p3617_p6 = scmp.lt.s32.totalorder %s3608_s29, %s3608_s29 }
  0x36   : > { %p3611_p10 = pnand %p3609_p9, %p4147_p13  ;;  %p3618_p12 = por %p3617_p6, %p3616_p2 }
  0x38   : > { %p3612_p1 = pneg %p3611_p10 }
  0x3a   : > { %p3619_p0 = pnand %p3618_p12, %p3612_p1 }
  0x3c   : > { %3622 = shalt.err (!%p3619_p0)
}
  0x3d   : > { %s4811_s30 = smov 128   ;;  %s4813_s22 = smov 8  }
  0x3e   : > { %3476 = dma.hbm_to_vmem [thread:$0]  (!%p4133_p11), %s4849_s6, 512, %s4126_s25, [#allocation12], %s4811_s30, %s4811_s30, %s4813_s22  }
  0x3f   : > { %s4851_s7 = sld [smem:[#allocation40_spill]] }
  0x45   : > { %s3623_s29 = scalar_lea.hbm %s4851_s7, 512 }
  0x46   : > { %p3624_p1 = scmp.ne.s32.totalorder %s4851_s7, %s3623_s29  ;;  %p3630_p10 = scmp.lt.u32.totalorder %s3623_s29, %s4851_s7 }
  0x48   : > { %p3626_p2 = pnand %p3624_p1, %p4147_p13 }
  0x4a   : > { %p3627_p6 = pneg %p3626_p2 }
  0x4c   : > { %p3632_p3 = pnand %p3630_p10, %p3627_p6 }
  0x4e   : > { %3635 = shalt.err (!%p3632_p3)
}
  0x4f   : > { %s3636_s25 = scalar_lea.vmem %s4137_s28, 512  ;;  %p3644_p12 = scmp.lt.s32.totalorder %s4137_s28, %s4137_s28 }
  0x50   : > { %p3637_p5 = scmp.ne.s32.totalorder %s4137_s28, %s3636_s25  ;;  %p3645_p0 = scmp.lt.s32.totalorder %s3636_s25, %s3636_s25 }
  0x52   : > { %p3639_p7 = pnand %p3637_p5, %p4147_p13  ;;  %p3646_p1 = por %p3645_p0, %p3644_p12 }
  0x54   : > { %p3640_p9 = pneg %p3639_p7 }
  0x56   : > { %p3647_p2 = pnand %p3646_p1, %p3640_p9 }
  0x58   : > { %3650 = shalt.err (!%p3647_p2)
}
  0x59   : > { %3479 = dma.hbm_to_vmem [thread:$0]  (!%p4133_p11), %s4851_s7, 512, %s4137_s28, [#allocation15], %s4811_s30, %s4811_s30, %s4813_s22  }
  0x5a   : > { %s52_s13 = sadd.s32 1, %s3989_s17  ;;  %s61_s16 = sadd.s32 1, %s3981_s15 }
  0x5b   : > { %p54_p6 = scmp.ge.s32.totalorder %s52_s13, 2  ;;  %p68_p10 = scmp.ne.s32.totalorder %s3981_s15, %s3977_s14 }
  0x5c   : > { %p69_p3 = scmp.eq.s32.totalorder %s3993_s18, 0  ;;  %p3512_p5 = scmp.lt.s32.totalorder %s3993_s18, 2 }
  0x5d   : > { %s4897_s13 = smov (%p54_p6, %s52_s13), 0  ;;  %p4853_p9 = scmp.eq.s32.totalorder %s4103_s19, 1 }
  0x5e   : > { %4852 = sst [smem:[#allocation34_spill]] %s4897_s13  ;;  %p70_p7 = por %p69_p3, %p68_p10 }
  0x5f   : > { %p4207_p12 = por %p4853_p9, %p68_p10  ;;  %s56_s12 = ssub.s32 %s3989_s17, %s4897_s13 }
  0x60   : > { %s4214_s28 = sand.u32 1, %s3981_s15   ;;  %p59_p0 = scmp.eq.s32.totalorder %s56_s12, 0 }
  0x61   : > { %s4854_s11 = scalar_select %p4207_p12, 1, 0 }
  0x62   : > { %s4817_s20 = sshll.u32 %s4214_s28, 3  ;;  %s4816_s27 = sshll.u32 %s3989_s17, 7 }
  0x63   : > { %4855 = sst [smem:[#allocation35_spill]] %s4854_s11  ;;  %p4218_p1 = pnand %p3512_p5, %p70_p7 }
  0x64   : > { %s4223_s25 = scalar_select %p59_p0, %s3981_s15, %s61_s16  }
  0x65   : > { %s4856_s29 = scalar_select %p4218_p1, 1, 0 }
  0x66   : > { %4857 = sst [smem:[#allocation36_spill]] %s4223_s25  ;;  %s4226_s9 = sand.u32 1, %s3993_s18  }
  0x67   : > { %s4858_s1 = sld [smem:[#allocation37_spill]]  ;;  %s411_s12 = scalar_lea.vmem [#allocation5], %s4817_s20 }
  0x68   : > { %s419_s6 = sshll.u32 %s411_s12, 4  ;;  %s4240_s16 = sshll.u32 %s4214_s28, 5  ;;  %s4237_s6 = int_to_ptr.vmem [resolvable:$true] %s419_s6 }
  0x69   : > { %p4247_p6 = pneg %p4218_p1 }
  0x6d   : > { %s4233_s22 = scalar_lea.hbm %s4858_s1, %s4816_s27  ;;  %s3656_s12 = scalar_lea.hbm %s4858_s1, 256 }
  0x6e   : > { %s3651_s13 = scalar_lea.hbm %s4233_s22, 128  ;;  %p3657_p5 = scmp.lt.u32.totalorder %s4233_s22, %s4858_s1 }
  0x6f   : > { %p3652_p2 = scmp.ne.s32.totalorder %s4233_s22, %s3651_s13  ;;  %p3658_p7 = scmp.lt.u32.totalorder %s3656_s12, %s3651_s13 }
  0x70   : > { %p3660_p0 = scmp.lt.u32.totalorder %s3651_s13, %s4233_s22 }
  0x71   : > { %p3654_p10 = pnand %p4247_p6, %p3652_p2  ;;  %p3659_p9 = por %p3658_p7, %p3657_p5 }
  0x73   : > { %p3655_p3 = pneg %p3654_p10  ;;  %p3661_p12 = por %p3660_p0, %p3659_p9 }
  0x75   : > { %p3662_p4 = pnand %p3661_p12, %p3655_p3 }
  0x77   : > { %3665 = shalt.err (!%p3662_p4)
}
  0x78   : > { %s3666_s7 = scalar_lea.vmem %s4237_s6, 128  ;;  %s3999_s27 = smov [#allocation5]  }
  0x79   : > { %p3667_p2 = scmp.ne.s32.totalorder %s4237_s6, %s3666_s7  ;;  %s3671_s10 = sshll.u32 %s3999_s27, 4  ;;  %s3672_s10 = int_to_ptr.vmem [resolvable:$false] %s3671_s10 }
  0x7a   : > { %s3673_s20 = scalar_lea.vmem %s3672_s10, 256  ;;  %p3674_p11 = scmp.lt.s32.totalorder %s4237_s6, %s3672_s10 }
  0x7b   : > { %p3669_p10 = pnand %p3667_p2, %p4247_p6  ;;  %p3675_p13 = scmp.lt.s32.totalorder %s3673_s20, %s3666_s7 }
  0x7d   : > { %p3670_p8 = pneg %p3669_p10  ;;  %p3676_p5 = por %p3675_p13, %p3674_p11 }
  0x7f   : > { %p3677_p7 = pnand %p3676_p5, %p3670_p8 }
  0x81   : > { %3680 = shalt.err (!%p3677_p7)
}
  0x82   : > { %s4860_s13 = scalar_lea.sflag [#allocation6], %s4226_s9  ;;  %s4273_s25 = sshll.u32 %s3989_s17, 9 }
  0x83   : > { %3489 = dma.hbm_to_vmem [thread:$0]  (!%p4218_p1), %s4233_s22, 128, %s4237_s6, %s4860_s13  }
  0x84   : > { %s4861_s3 = sld [smem:[#allocation38_spill]]  ;;  %s451_s10 = scalar_lea.vmem [#allocation8], %s4240_s16 }
  0x85   : > { %s458_s20 = sshll.u32 %s451_s10, 4  ;;  %s448_s1 = scalar_lea.sflag [#allocation9], %s4226_s9  ;;  %s4282_s20 = int_to_ptr.vmem [resolvable:$true] %s458_s20 }
  0x8a   : > { %s4279_s7 = scalar_lea.hbm %s4861_s3, %s4273_s25  ;;  %s3686_s13 = scalar_lea.hbm %s4861_s3, 1024 }
  0x8b   : > { %s3681_s15 = scalar_lea.hbm %s4279_s7, 512  ;;  %p3687_p13 = scmp.lt.u32.totalorder %s4279_s7, %s4861_s3 }
  0x8c   : > { %p3682_p4 = scmp.ne.s32.totalorder %s4279_s7, %s3681_s15  ;;  %p3688_p12 = scmp.lt.u32.totalorder %s3686_s13, %s3681_s15 }
  0x8d   : > { %p3690_p9 = scmp.lt.u32.totalorder %s3681_s15, %s4279_s7 }
  0x8e   : > { %p3684_p8 = pnand %p3682_p4, %p4247_p6  ;;  %p3689_p3 = por %p3688_p12, %p3687_p13 }
  0x90   : > { %p3685_p11 = pneg %p3684_p8  ;;  %p3691_p0 = por %p3690_p9, %p3689_p3 }
  0x92   : > { %p3692_p2 = pnand %p3691_p0, %p3685_p11 }
  0x94   : > { %3695 = shalt.err (!%p3692_p2)
}
  0x95   : > { %s3696_s10 = scalar_lea.vmem %s4282_s20, 512  ;;  %s4000_s6 = smov [#allocation8]  }
  0x96   : > { %p3697_p10 = scmp.ne.s32.totalorder %s4282_s20, %s3696_s10  ;;  %s3701_s22 = sshll.u32 %s4000_s6, 4  ;;  %s3702_s22 = int_to_ptr.vmem [resolvable:$false] %s3701_s22 }
  0x97   : > { %s3703_s12 = scalar_lea.vmem %s3702_s22, 1024  ;;  %p3704_p4 = scmp.lt.s32.totalorder %s4282_s20, %s3702_s22 }
  0x98   : > { %p3699_p5 = pnand %p3697_p10, %p4247_p6  ;;  %p3705_p8 = scmp.lt.s32.totalorder %s3703_s12, %s3696_s10 }
  0x9a   : > { %p3700_p7 = pneg %p3699_p5  ;;  %p3706_p13 = por %p3705_p8, %p3704_p4 }
  0x9c   : > { %p3707_p12 = pnand %p3706_p13, %p3700_p7 }
  0x9e   : > { %3710 = shalt.err (!%p3707_p12)
}
  0x9f   : > { %s4862_s15 = smov 8   ;;  %s4863_s13 = smov 128  }
  0xa0   : > { %3495 = dma.hbm_to_vmem [thread:$0]  (!%p4218_p1), %s4279_s7, 512, %s4282_s20, %s448_s1, %s4863_s13, %s4863_s13, %s4862_s15  }
  0xa1   : > { %s4001_s27 = smov [#allocation16]   ;;  %s3711_s10 = scalar_lea.hbm %s4802_s8, 512 }
  0xa2   : > { %s374_s6 = sshll.u32 %s4001_s27, 4  ;;  %p3712_p11 = scmp.ne.s32.totalorder %s4802_s8, %s3711_s10  ;;  %s375_s6 = int_to_ptr.vmem [resolvable:$true] %s374_s6 }
  0xa3   : > { %p4864_p3 = scmp.ne.s32.totalorder %s4850_s24, 0  ;;  %p3718_p2 = scmp.lt.u32.totalorder %s3711_s10, %s4802_s8 }
  0xa5   : > { %p3714_p9 = pnand %p3712_p11, %p4864_p3 }
  0xa7   : > { %p3715_p0 = pneg %p3714_p9 }
  0xa9   : > { %p3720_p10 = pnand %p3718_p2, %p3715_p0 }
  0xab   : > { %3723 = shalt.err (!%p3720_p10)
}
  0xac   : > { %s3724_s7 = scalar_lea.vmem %s375_s6, 512  ;;  %p3732_p8 = scmp.lt.s32.totalorder %s375_s6, %s375_s6 }
  0xad   : > { %p3725_p5 = scmp.ne.s32.totalorder %s375_s6, %s3724_s7  ;;  %p3733_p13 = scmp.lt.s32.totalorder %s3724_s7, %s3724_s7 }
  0xaf   : > { %p3727_p7 = pnand %p3725_p5, %p4864_p3  ;;  %p3734_p12 = por %p3733_p13, %p3732_p8 }
  0xb1   : > { %p3728_p4 = pneg %p3727_p7 }
  0xb3   : > { %p3735_p1 = pnand %p3734_p12, %p3728_p4 }
  0xb5   : > { %3738 = shalt.err (!%p3735_p1)
}
  0xb6   : > { %p4865_p11 = scmp.ne.s32.totalorder %s4848_s26, 0  ;;  %s4866_s19 = sshll.u32 %s3989_s17, 7 }
  0xb7   : > { %s4337_s20 = scalar_lea.hbm %s4794_s0, %s4866_s19  ;;  %s4867_s27 = sshll.u32 %s4214_s28, 3 }
  0xb8   : > { %3482 = dma.hbm_to_vmem [thread:$0]  (!%p4865_p11), %s4802_s8, 512, %s375_s6, [#allocation15], %s4863_s13, %s4863_s13, %s4862_s15  }
  0xb9   : > { %s392_s26 = scalar_lea.vmem [#allocation2], %s4867_s27  ;;  %s389_s10 = scalar_lea.sflag [#allocation3], %s4214_s28 }
  0xba   : > { %s400_s22 = sshll.u32 %s392_s26, 4  ;;  %s3739_s12 = scalar_lea.hbm %s4337_s20, 128  ;;  %s401_s22 = int_to_ptr.vmem [resolvable:$true] %s400_s22 }
  0xbb   : > { %p3740_p1 = scmp.ne.s32.totalorder %s4337_s20, %s3739_s12  ;;  %s3744_s3 = scalar_lea.hbm %s4794_s0, 256 }
  0xbc   : > { %p3745_p0 = scmp.lt.u32.totalorder %s4337_s20, %s4794_s0  ;;  %p3746_p2 = scmp.lt.u32.totalorder %s3744_s3, %s3739_s12 }
  0xbd   : > { %p3742_p3 = pnand %p3740_p1, %p4247_p6  ;;  %p3748_p5 = scmp.lt.u32.totalorder %s3739_s12, %s4337_s20 }
  0xbe   : > { %p3747_p10 = por %p3746_p2, %p3745_p0 }
  0xbf   : > { %p3743_p9 = pneg %p3742_p3 }
  0xc0   : > { %p3749_p7 = por %p3748_p5, %p3747_p10 }
  0xc2   : > { %p3750_p4 = pnand %p3749_p7, %p3743_p9 }
  0xc4   : > { %3753 = shalt.err (!%p3750_p4)
}
  0xc5   : > { %s3754_s28 = scalar_lea.vmem %s401_s22, 128  ;;  %s4002_s24 = smov [#allocation2]  }
  0xc6   : > { %p3755_p8 = scmp.ne.s32.totalorder %s401_s22, %s3754_s28  ;;  %s3759_s11 = sshll.u32 %s4002_s24, 4  ;;  %s3760_s11 = int_to_ptr.vmem [resolvable:$false] %s3759_s11 }
  0xc7   : > { %s3761_s27 = scalar_lea.vmem %s3760_s11, 256  ;;  %p3762_p11 = scmp.lt.s32.totalorder %s401_s22, %s3760_s11 }
  0xc8   : > { %p3757_p13 = pnand %p3755_p8, %p4247_p6  ;;  %p3763_p1 = scmp.lt.s32.totalorder %s3761_s27, %s3754_s28 }
  0xca   : > { %p3758_p12 = pneg %p3757_p13  ;;  %p3764_p3 = por %p3763_p1, %p3762_p11 }
  0xcc   : > { %p3765_p0 = pnand %p3764_p3, %p3758_p12 }
  0xce   : > { %3768 = shalt.err (!%p3765_p0)
}
  0xcf   : > { %p4868_p2 = scmp.ne.s32.totalorder %s4856_s29, 0  ;;  %s4363_s6 = scalar_lea.hbm %s4796_s2, %s4273_s25 }
  0xd0   : > { %s430_s7 = scalar_lea.vmem [#allocation7], %s4240_s16  ;;  %s3769_s18 = scalar_lea.hbm %s4363_s6, 512 }
  0xd1   : > { %3486 = dma.hbm_to_vmem [thread:$0]  (!%p4868_p2), %s4337_s20, 128, %s401_s22, %s389_s10  }
  0xd2   : > { %s437_s3 = sshll.u32 %s430_s7, 4  ;;  %p3770_p9 = scmp.ne.s32.totalorder %s4363_s6, %s3769_s18  ;;  %s4366_s3 = int_to_ptr.vmem [resolvable:$true] %s437_s3 }
  0xd3   : > { %s3774_s22 = scalar_lea.hbm %s4796_s2, 1024  ;;  %p3775_p7 = scmp.lt.u32.totalorder %s4363_s6, %s4796_s2 }
  0xd4   : > { %p3772_p10 = pnand %p3770_p9, %p4247_p6  ;;  %p3776_p4 = scmp.lt.u32.totalorder %s3774_s22, %s3769_s18 }
  0xd5   : > { %p3778_p13 = scmp.lt.u32.totalorder %s3769_s18, %s4363_s6 }
  0xd6   : > { %p3773_p5 = pneg %p3772_p10  ;;  %p3777_p8 = por %p3776_p4, %p3775_p7 }
  0xd8   : > { %p3779_p12 = por %p3778_p13, %p3777_p8 }
  0xda   : > { %p3780_p11 = pnand %p3779_p12, %p3773_p5 }
  0xdc   : > { %3783 = shalt.err (!%p3780_p11)
}
  0xdd   : > { %s3784_s24 = scalar_lea.vmem %s4366_s3, 512  ;;  %s4003_s11 = smov [#allocation7]  }
  0xde   : > { %p3785_p1 = scmp.ne.s32.totalorder %s4366_s3, %s3784_s24  ;;  %s3789_s27 = sshll.u32 %s4003_s11, 4  ;;  %s3790_s27 = int_to_ptr.vmem [resolvable:$false] %s3789_s27 }
  0xdf   : > { %s3791_s26 = scalar_lea.vmem %s3790_s27, 1024  ;;  %p3792_p9 = scmp.lt.s32.totalorder %s4366_s3, %s3790_s27 }
  0xe0   : > { %p3787_p3 = pnand %p3785_p1, %p4247_p6  ;;  %p3793_p10 = scmp.lt.s32.totalorder %s3791_s26, %s3784_s24 }
  0xe2   : > { %p3788_p0 = pneg %p3787_p3  ;;  %p3794_p7 = por %p3793_p10, %p3792_p9 }
  0xe4   : > { %p3795_p4 = pnand %p3794_p7, %p3788_p0 }
  0xe6   : > { %3798 = shalt.err (!%p3795_p4)
}
  0xe7   : > { %s4869_s12 = scalar_lea.sflag [#allocation6], %s4226_s9  ;;  %s4398_s19 = scalar_lea.hbm %s4798_s4, %s4273_s25 }
  0xe8   : > { %3492 = dma.hbm_to_vmem [thread:$0]  (!%p4868_p2), %s4363_s6, 512, %s4366_s3, %s4869_s12, %s4863_s13, %s4863_s13, %s4862_s15  }
  0xe9   : > { %s472_s20 = scalar_lea.vmem [#allocation10], %s4240_s16  ;;  %s3799_s10 = scalar_lea.hbm %s4398_s19, 512 }
  0xea   : > { %s479_s22 = sshll.u32 %s472_s20, 4  ;;  %p3800_p5 = scmp.ne.s32.totalorder %s4398_s19, %s3799_s10  ;;  %s4401_s22 = int_to_ptr.vmem [resolvable:$true] %s479_s22 }
  0xeb   : > { %s3804_s3 = scalar_lea.hbm %s4798_s4, 1024  ;;  %p3805_p12 = scmp.lt.u32.totalorder %s4398_s19, %s4798_s4 }
  0xec   : > { %p3802_p8 = pnand %p3800_p5, %p4247_p6  ;;  %p3806_p11 = scmp.lt.u32.totalorder %s3804_s3, %s3799_s10 }
  0xed   : > { %p3808_p3 = scmp.lt.u32.totalorder %s3799_s10, %s4398_s19 }
  0xee   : > { %p3803_p13 = pneg %p3802_p8  ;;  %p3807_p1 = por %p3806_p11, %p3805_p12 }
  0xf0   : > { %p3809_p0 = por %p3808_p3, %p3807_p1 }
  0xf2   : > { %p3810_p9 = pnand %p3809_p0, %p3803_p13 }
  0xf4   : > { %3813 = shalt.err (!%p3810_p9)
}
  0xf5   : > { %s3814_s27 = scalar_lea.vmem %s4401_s22, 512  ;;  %s4004_s26 = smov [#allocation10]  }
  0xf6   : > { %p3815_p10 = scmp.ne.s32.totalorder %s4401_s22, %s3814_s27  ;;  %s3819_s12 = sshll.u32 %s4004_s26, 4  ;;  %s3820_s12 = int_to_ptr.vmem [resolvable:$false] %s3819_s12 }
  0xf7   : > { %s3821_s7 = scalar_lea.vmem %s3820_s12, 1024  ;;  %p3822_p5 = scmp.lt.s32.totalorder %s4401_s22, %s3820_s12 }
  0xf8   : > { %p3817_p7 = pnand %p3815_p10, %p4247_p6  ;;  %p3823_p8 = scmp.lt.s32.totalorder %s3821_s7, %s3814_s27 }
  0xfa   : > { %p3818_p4 = pneg %p3817_p7  ;;  %p3824_p12 = por %p3823_p8, %p3822_p5 }
  0xfc   : > { %p3825_p11 = pnand %p3824_p12, %p3818_p4 }
  0xfe   : > { %3828 = shalt.err (!%p3825_p11)
}
  0xff   : > { %3498 = dma.hbm_to_vmem [thread:$0]  (!%p4868_p2), %s4398_s19, 512, %s4401_s22, %s448_s1, %s4863_s13, %s4863_s13, %s4862_s15  }
 0x100   : > { %s4433_s10 = scalar_lea.hbm %s4799_s5, %s4273_s25  ;;  %s493_s28 = scalar_lea.vmem [#allocation11], %s4240_s16 }
 0x101   : > { %s500_s6 = sshll.u32 %s493_s28, 4  ;;  %s490_s3 = scalar_lea.sflag [#allocation12], %s4226_s9  ;;  %s4436_s6 = int_to_ptr.vmem [resolvable:$true] %s500_s6 }
 0x102   : > { %s3829_s24 = scalar_lea.hbm %s4433_s10, 512  ;;  %s3834_s22 = scalar_lea.hbm %s4799_s5, 1024 }
 0x103   : > { %p3830_p13 = scmp.ne.s32.totalorder %s4433_s10, %s3829_s24  ;;  %p3835_p0 = scmp.lt.u32.totalorder %s4433_s10, %s4799_s5 }
 0x104   : > { %p3836_p9 = scmp.lt.u32.totalorder %s3834_s22, %s3829_s24  ;;  %p3838_p7 = scmp.lt.u32.totalorder %s3829_s24, %s4433_s10 }
 0x105   : > { %p3832_p1 = pnand %p3830_p13, %p4247_p6 }
 0x106   : > { %p3837_p10 = por %p3836_p9, %p3835_p0 }
 0x107   : > { %p3833_p3 = pneg %p3832_p1 }
 0x108   : > { %p3839_p4 = por %p3838_p7, %p3837_p10 }
 0x10a   : > { %p3840_p5 = pnand %p3839_p4, %p3833_p3 }
 0x10c   : > { %3843 = shalt.err (!%p3840_p5)
}
 0x10d   : > { %s3844_s16 = scalar_lea.vmem %s4436_s6, 512  ;;  %s4005_s27 = smov [#allocation11]  }
 0x10e   : > { %p3845_p8 = scmp.ne.s32.totalorder %s4436_s6, %s3844_s16  ;;  %s3849_s26 = sshll.u32 %s4005_s27, 4  ;;  %s3850_s26 = int_to_ptr.vmem [resolvable:$false] %s3849_s26 }
 0x10f   : > { %s3851_s12 = scalar_lea.vmem %s3850_s26, 1024  ;;  %p3852_p13 = scmp.lt.s32.totalorder %s4436_s6, %s3850_s26 }
 0x110   : > { %p3847_p12 = pnand %p3845_p8, %p4247_p6  ;;  %p3853_p1 = scmp.lt.s32.totalorder %s3851_s12, %s3844_s16 }
 0x112   : > { %p3848_p11 = pneg %p3847_p12  ;;  %p3854_p0 = por %p3853_p1, %p3852_p13 }
 0x114   : > { %p3855_p9 = pnand %p3854_p0, %p3848_p11 }
 0x116   : > { %3858 = shalt.err (!%p3855_p9)
}
 0x117   : > { %3501 = dma.hbm_to_vmem [thread:$0]  (!%p4868_p2), %s4433_s10, 512, %s4436_s6, %s490_s3, %s4863_s13, %s4863_s13, %s4862_s15  }
 0x118   : > { %p4870_p6 = scmp.ne.s32.totalorder %s4847_s23, 0 }
 0x119   : > { %s4468_s30 = sand.u32 (!%p4870_p6), 1, %s3977_s14   ;;  %p4871_p3 = scmp.ne.s32.totalorder (!%p4870_p6), %s4844_s21, 0 }
 0x11a   : > { %512 = sbr.rel (%p4870_p6) target bundleno = 1995 (0x7cb), region = 56  ;;  %s4471_s7 = sshll.u32 (!%p4870_p6), %s4468_s30, 3 }
 0x11b   : > { %s515_s29 = scalar_lea.sflag (!%p4870_p6), [#allocation3], %s4468_s30  ;;  %s518_s18 = scalar_lea.vmem (!%p4870_p6), [#allocation2], %s4471_s7 }
 0x121   : > { %3940 = dma.done.wait (%p4871_p3), %s515_s29, 128  }
 0x122   : > { %3942 = vsyncadd (%p4871_p3), %s515_s29, 4294967168  ;;  %s4872_s9 = sld [smem:[#allocation32_spill]]  ;;  %s527_s13 = scalar_lea.vmem [#allocation5], %s4471_s7 }
 0x128   : > { %s523_s23 = sand.u32 1, %s4872_s9  }
 0x129   : > { %s524_s15 = scalar_lea.sflag [#allocation6], %s523_s23 }
 0x12a   : > { %3944 = dma.done.wait (%p4871_p3), %s524_s15, 640  }
 0x12b   : > { %3946 = vsyncadd (%p4871_p3), %s524_s15, 4294966656  ;;  %s3135_s20 = sshll.u32 %s4468_s30, 5  ;;  %s542_s28 = scalar_lea.sflag [#allocation9], %s523_s23 }
 0x12c   : > { %s4486_s10 = scalar_lea.vmem [#allocation7], %s3135_s20  ;;  %s4488_s6 = scalar_lea.vmem [#allocation8], %s3135_s20 }
 0x12d   : > { %3948 = dma.done.wait (%p4871_p3), %s542_s28, 1024  }
 0x12e   : > { %3950 = vsyncadd (%p4871_p3), %s542_s28, 4294966272  ;;  %s4494_s3 = scalar_lea.vmem [#allocation10], %s3135_s20  ;;  %s560_s24 = scalar_lea.sflag [#allocation12], %s523_s23 }
 0x12f   : > { %s4496_s1 = scalar_lea.vmem [#allocation11], %s3135_s20 }
 0x130   : > { %3952 = dma.done.wait (%p4871_p3), %s560_s24, 512  }
 0x131   : > { %3954 = vsyncadd (%p4871_p3), %s560_s24, 4294966784  ;;  %p4873_p2 = scmp.eq.s32.totalorder %s4872_s9, 0 }
 0x133   : > { %3956 = dma.done.wait (%p4873_p2), [#allocation12], 512   ;;  %p4874_p10 = pmov %p4873_p2 }
 0x134   : > { %p4875_p7 = pmov %p4873_p2 }
 0x135   : > { %3958 = vsyncadd (%p4874_p10), [#allocation12], 4294966784 }
 0x136   : > { %3960 = dma.done.wait (%p4875_p7), [#allocation15], 1024   ;;  %p4876_p4 = pmov %p4873_p2 }
 0x137   : > { %v4006_v0 = vmov 0.0|0.0   ;;  %vm4007_vm0 = vmmov 0   ;;  %v4008_v1 = vmov 0.0   ;;  %v644_v2 = vld [vmem:[#allocation13] sm:$0xff]  ;;  %v645_v3 = vld [vmem:[#allocation13 + $0x8] sm:$0xff]  ;;  %v646_v7 = vld [vmem:[#allocation13 + $0x10] sm:$0xff]  ;;  %v894_v32 = vlaneseq }
 0x138   : > { %3962 = vsyncadd (%p4876_p4), [#allocation15], 4294966272  ;;  %3409 = vmatprep.subr.bf16.mxu0 %v4006_v0  ;;  %3415 = vmatprep.subr.bf16.mxu1 %v4006_v0  ;;  %v652_v4 = vld [vmem:[#allocation16] sm:$0xff]  ;;  %v3410_v5 = vpack.c.bf16 %v645_v3, %v644_v2  ;;  %v653_v6 = vld [vmem:[#allocation16 + $0x8] sm:$0xff]  ;;  %vm656_vm1 = vcmask 261120   ;;  %vm901_vm2 = vcmask 64512  }
 0x139   : > { %3264 = vmatprep.mubr.msk.f32.mxu0 %vm4007_vm0, %v4008_v1  ;;  %3275 = vmatprep.mubr.msk.f32.mxu1 %vm4007_vm0, %v4008_v1  ;;  %v647_v8 = vld [vmem:[#allocation13 + $0x18] sm:$0xff]  ;;  %v3416_v9 = vpack.c.bf16 %v653_v6, %v652_v4  ;;  %v654_v10 = vld [vmem:[#allocation16 + $0x10] sm:$0xff]  ;;  %v4516_v14 = vld [vmem:[%s518_s18] sm:$0xff]  ;;  %s4009_s21 = smov 120   ;;  %s4010_s19 = smov 112   ;;  %v4556_v33 = vshrl.u32 %v894_v32, 7 }
 0x13a   : > { %v655_v11 = vld [vmem:[#allocation16 + $0x18] sm:$0xff]  ;;  %3411 = vmatpush3.bf16.msra.mxu0 %v3410_v5  ;;  %v3413_v12 = vpack.c.bf16 %v647_v8, %v646_v7  ;;  %v648_v15 = vld [vmem:[#allocation14] sm:$0xff]  ;;  %v649_v16 = vld [vmem:[#allocation14 + $0x8] sm:$0xff]  ;;  %v730_v17 = vmul.f32 %v4516_v14, %v4516_v14  ;;  %s4011_s22 = smov 104   ;;  %v4558_v34 = vand.u32 127, %v894_v32  ;;  %s4012_s25 = smov 8  }
 0x13b   : > { %3417 = vmatpush3.bf16.msra.mxu1 %v3416_v9  ;;  %3412 = vmatprep.subr.bf16.mxu0 %v4006_v0  ;;  %v3419_v13 = vpack.c.bf16 %v655_v11, %v654_v10  ;;  %v3422_v18 = vpack.c.bf16 %v649_v16, %v648_v15  ;;  %v650_v19 = vld [vmem:[#allocation14 + $0x10] sm:$0xff]  ;;  %v651_v20 = vld [vmem:[#allocation14 + $0x18] sm:$0xff]  ;;  %v877_v23 = vld [vmem:[%s4486_s10] sm:$0xff]  ;;  %s4013_s11 = smov 16   ;;  %s4877_s16 = sld [smem:[#allocation30_spill]]  ;;  %vm2801_vm4 = vcmask 130048  }
 0x13c   : > { %3418 = vmatprep.subr.bf16.mxu1 %v4006_v0  ;;  %v3425_v21 = vpack.c.bf16 %v651_v20, %v650_v19  ;;  %v4530_v22 = vld [vmem:[%s527_s13] sm:$0xff]  ;;  %v978_v24 = vmul.f32 %v877_v23, %v877_v23  ;;  %v881_v25 = vld [vmem:[%s4488_s6] sm:$0xff]  ;;  %vm900_vm3 = vcmp.gt.s32.totalorder %v4558_v34, %v4556_v33  ;;  %v878_v54 = vld [vmem:[%s4486_s10 + $0x8] sm:$0xff]  ;;  %s4014_s27 = smov 24   ;;  %s4878_s26 = sld [smem:[#allocation35_spill]]  ;;  %vm2803_vm5 = vcmask 195584  }
 0x13d   : > { %v885_v47 = vld [vmem:[%s4494_s3] sm:$0xff]  ;;  %v1449_v57 = vmul.f32 %v878_v54, %v878_v54  ;;  %v882_v59 = vld [vmem:[%s4488_s6 + $0x8] sm:$0xff]  ;;  %v879_v2 = vld [vmem:[%s4486_s10 + $0x10] sm:$0xff]  ;;  %s634_s29 = scalar_lea.vmem [#allocation17], %s4471_s7  ;;  %s4879_s15 = sld [smem:[#allocation41_spill]] }
 0x13e   : > { %3414 = vmatpush3.bf16.msra.mxu0 %v3413_v12  ;;  %v979_v26 = vadd.f32 %v978_v24, %v881_v25  ;;  %v1224_v48 = vmul.f32 %v885_v47, %v885_v47  ;;  %v889_v49 = vld [vmem:[%s4496_s1] sm:$0xff]  ;;  %v1921_v5 = vmul.f32 %v879_v2, %v879_v2  ;;  %v883_v6 = vld [vmem:[%s4488_s6 + $0x10] sm:$0xff]  ;;  %v880_v10 = vld [vmem:[%s4486_s10 + $0x18] sm:$0xff]  ;;  %s2844_s18 = sshll.u32 %s634_s29, 4  ;;  %s2825_s10 = scalar_lea.sflag [#allocation4], %s4468_s30  ;;  %s4708_s18 = int_to_ptr.vmem [resolvable:$true] %s2844_s18 }
 0x13f   : > { %3420 = vmatpush3.bf16.msra.mxu1 %v3419_v13  ;;  %3294 = vmatprep.subr.mxu0 %v4008_v1  ;;  %v1450_v61 = vadd.f32 %v1449_v57, %v882_v59  ;;  %v2393_v12 = vmul.f32 %v880_v10, %v880_v10  ;;  %v884_v13 = vld [vmem:[%s4488_s6 + $0x18] sm:$0xff]  ;;  %v886_v57 = vld [vmem:[%s4494_s3 + $0x8] sm:$0xff]  ;;  %s3859_s28 = scalar_lea.vmem %s4708_s18, 128  ;;  %s4015_s6 = smov [#allocation17]  }
 0x140   : > { %3421 = vmatprep.subr.bf16.mxu1 %v4006_v0  ;;  %v1225_v50 = vadd.f32 %v1224_v48, %v889_v49  ;;  %v1922_v8 = vadd.f32 %v1921_v5, %v883_v6  ;;  %p3860_p5 = scmp.ne.s32.totalorder %s4708_s18, %s3859_s28 }
 0x141   : > { %3265 = vmatmul.mubr.msk.f32.vlgmr.msra.gmra.mrb[0].mxu0 %vm656_vm1, %v4516_v14  ;;  %v2394_v15 = vadd.f32 %v2393_v12, %v884_v13  ;;  %s3185_s12 = sshll.u32 %s4877_s16, 7 }
 0x142   : > { %3276 = vmatmul.mubr.msk.f32.vlgmr.msra.gmra.mrb[0].mxu1 %vm656_vm1, %v730_v17  ;;  %3296 = vmatprep.mubr.msk.f32.mxu0 %vm4007_vm0, %v4008_v1  ;;  %p4881_p8 = scmp.ne.s32.totalorder %s4878_s26, 0 }
 0x143   : > { %3423 = vmatpush3.bf16.msra.mxu1 %v3422_v18  ;;  %3286 = vmatprep.mubr.msk.f32.mxu1 %vm4007_vm0, %v4008_v1  ;;  %s4880_s20 = smov %s4879_s15  ;;  %s4706_s13 = scalar_lea.hbm %s4879_s15, %s3185_s12 }
 0x144   : > { %3424 = vmatprep.subr.bf16.mxu1 %v4006_v0  ;;  %p3861_p12 = pnand %p3860_p5, %p4881_p8 }
 0x146   : > { %p3862_p11 = pneg %p3861_p12 }
 0x147   : > { %3426 = vmatpush3.bf16.msra.mxu1 %v3425_v21  ;;  %3295 = vmatpush3.xpose.msk.msra.mxu0 %vm901_vm2, %v881_v25 }
 0x148   : > { %3289 = vmatprep.subr.mxu1 %v4008_v1  ;;  %3299 = vmatprep.subr.mxu0 %v4008_v1 }
 0x14a   : > { %3287 = vmatmul.mubr.msk.f32.vlgmr.msra.gmra.mrb[0].mxu1 %vm656_vm1, %v4530_v22 }
 0x14b   : > { %3291 = vmatprep.mubr.msk.f32.mxu1 %vm4007_vm0, %v4008_v1 }
 0x150   : > { %3290 = vmatpush3.xpose.msk.msra.mxu1 %vm901_vm2, %v877_v23 }
 0x151   : > { %3304 = vmatprep.subr.mxu1 %v4008_v1 }
 0x214   : > { %v726_v27 = vpop.f32.mrb[0].mxu0 }
 0x215   : > { %v980_v28 = vmul.f32 %v726_v27, %v726_v27  ;;  %1372 = vrot.lane.b32.xlu1 %v726_v27, %s4009_s21  ;;  %v3266_v29 = vpop.f32.mrb[1].mxu0  ;;  %3292 = vmatmul.mubr.msk.f32.vlgmr.msra.gmra.mrb[2].mxu1 %vm901_vm2, %v726_v27 }
 0x216   : > { %3306 = vmatprep.mubr.msk.f32.mxu1 %vm4007_vm0, %v4008_v1  ;;  %3305 = vmatpush3.msra.mxu1 %v885_v47 }
 0x217   : > { %3297 = vmatmul.mubr.msk.f32.vlgmr.msra.gmra.mrb[2].mxu0 %vm901_vm2, %v980_v28  ;;  %3319 = vmatprep.subr.mxu1 %v4008_v1 }
 0x218   : > { %3300 = vmatpush3.xpose.msk.msra.mxu0 %vm901_vm2, %v979_v26  ;;  %3301 = vmatprep.mubr.msk.f32.mxu0 %vm4007_vm0, %v4008_v1 }
 0x219   : > { %1451 = vrot.lane.b32.xlu1 %v980_v28, %s4009_s21  ;;  %3309 = vmatprep.subr.mxu0 %v4008_v1 }
 0x21d   : > { %1844 = vrot.lane.b32.xlu1 %v726_v27, %s4010_s19  ;;  %v873_v30 = vpop.f32.mrb[0].mxu1 }
 0x21e   : > { %v3288_v31 = vpop.f32.mrb[1].mxu1 }
 0x21f   : > { %3302 = vmatmul.mubr.msk.f32.vlgmr.msra.gmra.mrb[2].mxu0 %vm901_vm2, %v873_v30 }
 0x220   : > { %3311 = vmatprep.mubr.msk.f32.mxu0 %vm4007_vm0, %v4008_v1  ;;  %3310 = vmatpush3.msra.mxu0 %v889_v49 }
 0x221   : > { %1923 = vrot.lane.b32.xlu1 %v980_v28, %s4010_s19  ;;  %3314 = vmatprep.subr.mxu0 %v4008_v1 }
 0x225   : > { %2000 = vrot.lane.b32.xlu1 %v873_v30, %s4010_s19 }
 0x229   : > { %2316 = vrot.lane.b32.xlu1 %v726_v27, %s4011_s22 }
 0x22d   : > { %2395 = vrot.lane.b32.xlu1 %v980_v28, %s4011_s22 }
 0x231   : > { %2472 = vrot.lane.b32.xlu1 %v873_v30, %s4011_s22 }
 0x287   : > { %v1373_v56 = vpop.permute.xlu1 %1372 }
 0x28b   : > { %v1452_v63 = vpop.permute.xlu1 %1451 }
 0x28f   : > { %v1845_v3 = vpop.permute.xlu1 %1844 }
 0x293   : > { %v1924_v7 = vpop.permute.xlu1 %1923 }
 0x297   : > { %v2001_v9 = vpop.permute.xlu1 %2000 }
 0x29b   : > { %v2317_v11 = vpop.permute.xlu1 %2316 }
 0x29f   : > { %v2396_v16 = vpop.permute.xlu1 %2395 }
 0x2a3   : > { %v2473_v17 = vpop.permute.xlu1 %2472 }
 0x2e8   : > { %v974_v35 = vpop.f32.mrb[2].mxu1 }
 0x2e9   : > { %v1133_v36 = vmul.f32 0.17677669, %v974_v35  ;;  %v3293_v37 = vpop.f32.mrb[3].mxu1 }
 0x2eb   : > { %v1135_v38 = vsel %vm900_vm3, -inf, %v1133_v36 }
 0x2ec   : > { %v1136_v39 = vsel %vm901_vm2, %v1135_v38, -inf }
 0x2ed   : > { %1137 = vmax.xlane.f32.xlu0 %v1136_v39 }
 0x2f2   : > { %v1129_v40 = vpop.f32.mrb[2].mxu0 }
 0x2f3   : > { %v3303_v41 = vpop.f32.mrb[3].mxu0  ;;  %v1134_v62 = vmul.f32 0.03125, %v1129_v40 }
 0x37a   : > { %v1138_v42 = vpop.xlane.xlu0 %1137 }
 0x37b   : > { %v1139_v43 = vsub.f32 %v1135_v38, %v1138_v42 }
 0x37d   : > { %v1140_v44 = vmul.f32 1.442695, %v1139_v43 }
 0x37f   : > { %3579 = vpow2.f32 %v1140_v44 }
 0x389   : > { %v3580_v45 = vpop.eup %3579 }
 0x38a   : > { %v1142_v46 = vsel %vm901_vm2, %v3580_v45, 0.0 }
 0x38b   : > { %1143 = vadd.xlane.f32.xlu0 %v1142_v46 }
 0x3a1   : > { %1528 = vrot.lane.b32.xlu0 %v873_v30, %s4009_s21 }
 0x418   : > { %v1144_v51 = vpop.xlane.xlu0 %1143 }
 0x419   : > { %3581 = vrcp.f32 %v1144_v51 }
 0x41c   : > { %v1529_v4 = vpop.permute.xlu0 %1528 }
 0x423   : > { %v3582_v52 = vpop.eup %3581 }
 0x424   : > { %v1146_v53 = vmul.f32 %v3582_v52, %v3580_v45 }
 0x426   : > { %3307 = vmatmul.mubr.msk.f32.vlgmr.msra.gmra.mrb[4].mxu1 %vm901_vm2, %v1146_v53  ;;  %v1147_v55 = vmul.f32 %v1146_v53, %v1146_v53 }
 0x427   : > { %3320 = vmatpush3.xpose.msk.msra.mxu1 %vm901_vm2, %v878_v54  ;;  %3321 = vmatprep.mubr.msk.f32.mxu1 %vm4007_vm0, %v4008_v1 }
 0x428   : > { %v1148_v58 = vsub.f32 %v1146_v53, %v1147_v55  ;;  %3312 = vmatmul.mubr.msk.f32.vlgmr.msra.gmra.mrb[4].mxu0 %vm901_vm2, %v1147_v55  ;;  %3324 = vmatprep.subr.mxu1 %v4008_v1 }
 0x429   : > { %3315 = vmatpush3.msra.mxu0 %v1225_v50  ;;  %3316 = vmatprep.mubr.msk.f32.mxu0 %vm4007_vm0, %v4008_v1 }
 0x42a   : > { %3322 = vmatmul.mubr.msk.f32.vlgmr.msra.gmra.mrb[6].mxu1 %vm901_vm2, %v1373_v56  ;;  %v1149_v60 = vmul.f32 %v1148_v58, %v1148_v58  ;;  %3334 = vmatprep.subr.mxu0 %v4008_v1 }
 0x42b   : > { %3325 = vmatpush3.xpose.msk.msra.mxu1 %vm901_vm2, %v882_v59  ;;  %3326 = vmatprep.mubr.msk.f32.mxu1 %vm4007_vm0, %v4008_v1 }
 0x42c   : > { %3329 = vmatprep.subr.mxu1 %v4008_v1  ;;  %v1150_v0 = vmul.f32 %v1149_v60, %v1134_v62  ;;  %v1696_v62 = vmul.f32 %v886_v57, %v886_v57 }
 0x42e   : > { %3327 = vmatmul.mubr.msk.f32.vlgmr.msra.gmra.mrb[8].mxu1 %vm901_vm2, %v1452_v63 }
 0x42f   : > { %3330 = vmatpush3.xpose.msk.msra.mxu1 %vm901_vm2, %v1450_v61  ;;  %3331 = vmatprep.mubr.msk.f32.mxu1 %vm4007_vm0, %v4008_v1 }
 0x430   : > { %3317 = vmatmul.mubr.msk.f32.vlgmr.msra.gmra.mrb[4].mxu0 %vm901_vm2, %v1150_v0  ;;  %3349 = vmatprep.subr.mxu1 %v4008_v1  ;;  %v890_v0 = vld [vmem:[%s4496_s1 + $0x8] sm:$0xff] }
 0x431   : > { %3336 = vmatprep.mubr.msk.f32.mxu0 %vm4007_vm0, %v4008_v1  ;;  %3335 = vmatpush3.msra.mxu0 %v886_v57 }
 0x432   : > { %3339 = vmatprep.subr.mxu0 %v4008_v1 }
 0x436   : > { %3332 = vmatmul.mubr.msk.f32.vlgmr.msra.gmra.mrb[8].mxu1 %vm901_vm2, %v1529_v4 }
 0x437   : > { %3350 = vmatpush3.xpose.msk.msra.mxu1 %vm901_vm2, %v879_v2  ;;  %3351 = vmatprep.mubr.msk.f32.mxu1 %vm4007_vm0, %v4008_v1 }
 0x438   : > { %3354 = vmatprep.subr.mxu1 %v4008_v1 }
 0x43a   : > { %3352 = vmatmul.mubr.msk.f32.vlgmr.msra.gmra.mrb[10].mxu1 %vm901_vm2, %v1845_v3  ;;  %v1697_v3 = vadd.f32 %v1696_v62, %v890_v0 }
 0x43b   : > { %3355 = vmatpush3.xpose.msk.msra.mxu1 %vm901_vm2, %v883_v6  ;;  %3356 = vmatprep.mubr.msk.f32.mxu1 %vm4007_vm0, %v4008_v1 }
 0x43c   : > { %3359 = vmatprep.subr.mxu1 %v4008_v1 }
 0x43e   : > { %3357 = vmatmul.mubr.msk.f32.vlgmr.msra.gmra.mrb[12].mxu1 %vm901_vm2, %v1924_v7 }
 0x43f   : > { %3360 = vmatpush3.xpose.msk.msra.mxu1 %vm901_vm2, %v1922_v8  ;;  %3361 = vmatprep.mubr.msk.f32.mxu1 %vm4007_vm0, %v4008_v1 }
 0x440   : > { %3379 = vmatprep.subr.mxu1 %v4008_v1 }
 0x446   : > { %3362 = vmatmul.mubr.msk.f32.vlgmr.msra.gmra.mrb[12].mxu1 %vm901_vm2, %v2001_v9  ;;  %v887_v9 = vld [vmem:[%s4494_s3 + $0x10] sm:$0xff] }
 0x447   : > { %3380 = vmatpush3.xpose.msk.msra.mxu1 %vm901_vm2, %v880_v10  ;;  %3381 = vmatprep.mubr.msk.f32.mxu1 %vm4007_vm0, %v4008_v1 }
 0x448   : > { %3384 = vmatprep.subr.mxu1 %v4008_v1 }
 0x44a   : > { %3382 = vmatmul.mubr.msk.f32.vlgmr.msra.gmra.mrb[14].mxu1 %vm901_vm2, %v2317_v11  ;;  %v2168_v11 = vmul.f32 %v887_v9, %v887_v9 }
 0x44b   : > { %3385 = vmatpush3.xpose.msk.msra.mxu1 %vm901_vm2, %v884_v13  ;;  %3386 = vmatprep.mubr.msk.f32.mxu1 %vm4007_vm0, %v4008_v1  ;;  %v891_v13 = vld [vmem:[%s4496_s1 + $0x10] sm:$0xff] }
 0x44c   : > { %3389 = vmatprep.subr.mxu1 %v4008_v1 }
 0x44e   : > { %3387 = vmatmul.mubr.msk.f32.vlgmr.msra.gmra.mrb[16].mxu1 %vm901_vm2, %v2396_v16  ;;  %v2169_v16 = vadd.f32 %v2168_v11, %v891_v13 }
 0x44f   : > { %3390 = vmatpush3.xpose.msk.msra.mxu1 %vm901_vm2, %v2394_v15  ;;  %3391 = vmatprep.mubr.msk.f32.mxu1 %vm4007_vm0, %v4008_v1 }
 0x456   : > { %3392 = vmatmul.mubr.msk.f32.vlgmr.msra.gmra.mrb[16].mxu1 %vm901_vm2, %v2473_v17 }
 0x4f9   : > { %v4630_v18 = vpop.f32.mrb[4].mxu1 }
 0x4fa   : > { %v3308_v19 = vpop.f32.mrb[5].mxu1 }
 0x4fd   : > { %v1445_v20 = vpop.f32.mrb[6].mxu1 }
 0x4fe   : > { %v1605_v21 = vmul.f32 0.17677669, %v1445_v20  ;;  %v3323_v23 = vpop.f32.mrb[7].mxu1 }
 0x500   : > { %v1607_v24 = vsel %vm900_vm3, -inf, %v1605_v21 }
 0x501   : > { %v1608_v25 = vsel %vm901_vm2, %v1607_v24, -inf }
 0x502   : > { %1609 = vmax.xlane.f32.xlu0 %v1608_v25 }
 0x503   : > { %v4636_v26 = vpop.f32.mrb[4].mxu0 }
 0x504   : > { %v3318_v27 = vpop.f32.mrb[5].mxu0 }
 0x509   : > { %v1601_v28 = vpop.f32.mrb[8].mxu1 }
 0x50a   : > { %v3333_v29 = vpop.f32.mrb[9].mxu1  ;;  %v1606_v7 = vmul.f32 0.03125, %v1601_v28 }
 0x50b   : > { %v892_v29 = vld [vmem:[%s4496_s1 + $0x18] sm:$0xff] }
 0x50d   : > { %v1917_v30 = vpop.f32.mrb[10].mxu1 }
 0x50e   : > { %v2077_v31 = vmul.f32 0.17677669, %v1917_v30  ;;  %v3353_v32 = vpop.f32.mrb[11].mxu1 }
 0x510   : > { %v2079_v35 = vsel %vm900_vm3, -inf, %v2077_v31 }
 0x511   : > { %v2080_v36 = vsel %vm901_vm2, %v2079_v35, -inf }
 0x512   : > { %2081 = vmax.xlane.f32.xlu1 %v2080_v36 }
 0x519   : > { %v4642_v37 = vpop.f32.mrb[12].mxu1 }
 0x51a   : > { %v3363_v38 = vpop.f32.mrb[13].mxu1  ;;  %v2078_v21 = vmul.f32 0.03125, %v4642_v37 }
 0x51d   : > { %v2389_v39 = vpop.f32.mrb[14].mxu1 }
 0x51e   : > { %v2549_v40 = vmul.f32 0.17677669, %v2389_v39  ;;  %v3383_v41 = vpop.f32.mrb[15].mxu1 }
 0x520   : > { %v2551_v42 = vsel %vm900_vm3, -inf, %v2549_v40 }
 0x521   : > { %v2552_v43 = vsel %vm901_vm2, %v2551_v42, -inf }
 0x522   : > { %2553 = vmax.xlane.f32.xlu0 %v2552_v43 }
 0x529   : > { %v4648_v44 = vpop.f32.mrb[16].mxu1 }
 0x52a   : > { %v3393_v45 = vpop.f32.mrb[17].mxu1  ;;  %v2550_v36 = vmul.f32 0.03125, %v4648_v44 }
 0x58f   : > { %v1610_v46 = vpop.xlane.xlu0 %1609 }
 0x590   : > { %v1611_v47 = vsub.f32 %v1607_v24, %v1610_v46  ;;  %v888_v24 = vld [vmem:[%s4494_s3 + $0x18] sm:$0xff]  ;;  %s3863_s3 = sshll.u32 %s4015_s6, 4  ;;  %s3864_s3 = int_to_ptr.vmem [resolvable:$false] %s3863_s3 }
 0x591   : > { %v2640_v27 = vmul.f32 %v888_v24, %v888_v24  ;;  %s3865_s24 = scalar_lea.vmem %s3864_s3, 256  ;;  %p3866_p13 = scmp.lt.s32.totalorder %s4708_s18, %s3864_s3 }
 0x592   : > { %v1612_v48 = vmul.f32 1.442695, %v1611_v47  ;;  %p3867_p1 = scmp.lt.s32.totalorder %s3865_s24, %s3859_s28 }
 0x593   : > { %v2641_v31 = vadd.f32 %v2640_v27, %v892_v29 }
 0x594   : > { %3583 = vpow2.f32 %v1612_v48  ;;  %p3868_p0 = por %p3867_p1, %p3866_p13 }
 0x596   : > { %p3869_p9 = pnand %p3868_p0, %p3862_p11 }
 0x59e   : > { %v3584_v49 = vpop.eup %3583 }
 0x59f   : > { %v2082_v50 = vpop.xlane.xlu1 %2081  ;;  %v1614_v51 = vsel %vm901_vm2, %v3584_v49, 0.0 }
 0x5a0   : > { %v2083_v52 = vsub.f32 %v2079_v35, %v2082_v50  ;;  %1615 = vadd.xlane.f32.xlu0 %v1614_v51 }
 0x5a2   : > { %v2084_v53 = vmul.f32 1.442695, %v2083_v52 }
 0x5a4   : > { %3585 = vpow2.f32 %v2084_v53 }
 0x5ae   : > { %v3586_v33 = vpop.eup %3585 }
 0x5af   : > { %v2554_v34 = vpop.xlane.xlu0 %2553  ;;  %v2086_v54 = vsel %vm901_vm2, %v3586_v33, 0.0 }
 0x5b0   : > { %v2555_v55 = vsub.f32 %v2551_v42, %v2554_v34  ;;  %2087 = vadd.xlane.f32.xlu1 %v2086_v54 }
 0x5b2   : > { %v2556_v56 = vmul.f32 1.442695, %v2555_v55 }
 0x5b4   : > { %3587 = vpow2.f32 %v2556_v56 }
 0x5be   : > { %v3588_v58 = vpop.eup %3587 }
 0x5bf   : > { %v2558_v59 = vsel %vm901_vm2, %v3588_v58, 0.0 }
 0x5c0   : > { %2559 = vadd.xlane.f32.xlu0 %v2558_v59 }
 0x62d   : > { %v1616_v60 = vpop.xlane.xlu0 %1615 }
 0x62e   : > { %3589 = vrcp.f32 %v1616_v60 }
 0x638   : > { %v3590_v61 = vpop.eup %3589 }
 0x639   : > { %v1618_v63 = vmul.f32 %v3590_v61, %v3584_v49 }
 0x63b   : > { %3337 = vmatmul.mubr.msk.f32.vlgmr.msra.gmra.mrb[6].mxu0 %vm901_vm2, %v1618_v63  ;;  %v1619_v2 = vmul.f32 %v1618_v63, %v1618_v63 }
 0x63c   : > { %3340 = vmatpush3.msra.mxu0 %v890_v0  ;;  %3341 = vmatprep.mubr.msk.f32.mxu0 %vm4007_vm0, %v4008_v1 }
 0x63d   : > { %v2088_v4 = vpop.xlane.xlu1 %2087  ;;  %3344 = vmatprep.subr.mxu0 %v4008_v1  ;;  %v1620_v5 = vsub.f32 %v1618_v63, %v1619_v2 }
 0x63e   : > { %3591 = vrcp.f32 %v2088_v4 }
 0x63f   : > { %3342 = vmatmul.mubr.msk.f32.vlgmr.msra.gmra.mrb[8].mxu0 %vm901_vm2, %v1619_v2  ;;  %v1621_v6 = vmul.f32 %v1620_v5, %v1620_v5 }
 0x640   : > { %3345 = vmatpush3.msra.mxu0 %v1697_v3  ;;  %3346 = vmatprep.mubr.msk.f32.mxu0 %vm4007_vm0, %v4008_v1 }
 0x641   : > { %3364 = vmatprep.subr.mxu0 %v4008_v1  ;;  %v1622_v8 = vmul.f32 %v1621_v6, %v1606_v7 }
 0x647   : > { %3347 = vmatmul.mubr.msk.f32.vlgmr.msra.gmra.mrb[8].mxu0 %vm901_vm2, %v1622_v8 }
 0x648   : > { %v3592_v10 = vpop.eup %3591  ;;  %3365 = vmatpush3.msra.mxu0 %v887_v9  ;;  %3366 = vmatprep.mubr.msk.f32.mxu0 %vm4007_vm0, %v4008_v1 }
 0x649   : > { %v2090_v12 = vmul.f32 %v3592_v10, %v3586_v33  ;;  %3369 = vmatprep.subr.mxu0 %v4008_v1 }
 0x64b   : > { %3367 = vmatmul.mubr.msk.f32.vlgmr.msra.gmra.mrb[10].mxu0 %vm901_vm2, %v2090_v12  ;;  %v2091_v15 = vmul.f32 %v2090_v12, %v2090_v12 }
 0x64c   : > { %3370 = vmatpush3.msra.mxu0 %v891_v13  ;;  %3371 = vmatprep.mubr.msk.f32.mxu0 %vm4007_vm0, %v4008_v1 }
 0x64d   : > { %v2560_v17 = vpop.xlane.xlu0 %2559  ;;  %3374 = vmatprep.subr.mxu0 %v4008_v1  ;;  %v2092_v19 = vsub.f32 %v2090_v12, %v2091_v15 }
 0x64e   : > { %3593 = vrcp.f32 %v2560_v17 }
 0x64f   : > { %3372 = vmatmul.mubr.msk.f32.vlgmr.msra.gmra.mrb[12].mxu0 %vm901_vm2, %v2091_v15  ;;  %v2093_v20 = vmul.f32 %v2092_v19, %v2092_v19 }
 0x650   : > { %3375 = vmatpush3.msra.mxu0 %v2169_v16  ;;  %3376 = vmatprep.mubr.msk.f32.mxu0 %vm4007_vm0, %v4008_v1 }
 0x651   : > { %3394 = vmatprep.subr.mxu0 %v4008_v1  ;;  %v2094_v23 = vmul.f32 %v2093_v20, %v2078_v21 }
 0x657   : > { %3377 = vmatmul.mubr.msk.f32.vlgmr.msra.gmra.mrb[12].mxu0 %vm901_vm2, %v2094_v23 }
 0x658   : > { %v3594_v25 = vpop.eup %3593  ;;  %3395 = vmatpush3.msra.mxu0 %v888_v24  ;;  %3396 = vmatprep.mubr.msk.f32.mxu0 %vm4007_vm0, %v4008_v1 }
 0x659   : > { %v2562_v28 = vmul.f32 %v3594_v25, %v3588_v58  ;;  %3399 = vmatprep.subr.mxu0 %v4008_v1 }
 0x65b   : > { %3397 = vmatmul.mubr.msk.f32.vlgmr.msra.gmra.mrb[14].mxu0 %vm901_vm2, %v2562_v28  ;;  %v2563_v30 = vmul.f32 %v2562_v28, %v2562_v28 }
 0x65c   : > { %3400 = vmatpush3.msra.mxu0 %v892_v29  ;;  %3401 = vmatprep.mubr.msk.f32.mxu0 %vm4007_vm0, %v4008_v1 }
 0x65d   : > { %3404 = vmatprep.subr.mxu0 %v4008_v1  ;;  %v2564_v32 = vsub.f32 %v2562_v28, %v2563_v30 }
 0x65f   : > { %3402 = vmatmul.mubr.msk.f32.vlgmr.msra.gmra.mrb[16].mxu0 %vm901_vm2, %v2563_v30  ;;  %v2565_v35 = vmul.f32 %v2564_v32, %v2564_v32 }
 0x660   : > { %3405 = vmatpush3.msra.mxu0 %v2641_v31  ;;  %3406 = vmatprep.mubr.msk.f32.mxu0 %vm4007_vm0, %v4008_v1 }
 0x661   : > { %v2566_v37 = vmul.f32 %v2565_v35, %v2550_v36 }
 0x667   : > { %3407 = vmatmul.mubr.msk.f32.vlgmr.msra.gmra.mrb[16].mxu0 %vm901_vm2, %v2566_v37 }
 0x70e   : > { %v1692_v38 = vpop.f32.mrb[6].mxu0 }
 0x70f   : > { %2789 = vrot.lane.b32.xlu1 %v1692_v38, %s4012_s25  ;;  %v3338_v39 = vpop.f32.mrb[7].mxu0 }
 0x71a   : > { %v1840_v40 = vpop.f32.mrb[8].mxu0 }
 0x71b   : > { %2808 = vrot.lane.b32.xlu0 %v1840_v40, %s4012_s25  ;;  %v3348_v41 = vpop.f32.mrb[9].mxu0 }
 0x71e   : > { %v2164_v42 = vpop.f32.mrb[10].mxu0 }
 0x71f   : > { %2793 = vrot.lane.b32.xlu1 %v2164_v42, %s4013_s11  ;;  %v3368_v43 = vpop.f32.mrb[11].mxu0 }
 0x72a   : > { %v2312_v45 = vpop.f32.mrb[12].mxu0 }
 0x72b   : > { %2812 = vrot.lane.b32.xlu1 %v2312_v45, %s4013_s11  ;;  %v3378_v1 = vpop.f32.mrb[13].mxu0 }
 0x72e   : > { %v2636_v44 = vpop.f32.mrb[14].mxu0 }
 0x72f   : > { %2797 = vrot.lane.b32.xlu0 %v2636_v44, %s4014_s27  ;;  %v3398_v46 = vpop.f32.mrb[15].mxu0 }
 0x73a   : > { %v2784_v47 = vpop.f32.mrb[16].mxu0 }
 0x73b   : > { %2816 = vrot.lane.b32.xlu1 %v2784_v47, %s4014_s27  ;;  %v3408_v48 = vpop.f32.mrb[17].mxu0 }
 0x781   : > { %v2790_v49 = vpop.permute.xlu1 %2789 }
 0x782   : > { %v2800_v52 = vsel %vm901_vm2, %v4630_v18, %v2790_v49 }
 0x78d   : > { %v2809_v50 = vpop.permute.xlu0 %2808 }
 0x791   : > { %v2794_v51 = vpop.permute.xlu1 %2793 }
 0x792   : > { %v2802_v53 = vsel %vm2801_vm4, %v2800_v52, %v2794_v51 }
 0x7a1   : > { %v2798_v33 = vpop.permute.xlu0 %2797 }
 0x7a2   : > { %v2804_v34 = vsel %vm2803_vm5, %v2802_v53, %v2798_v33 }
 0x7a3   : > { %v2805_v54 = vadd.f32 %v2804_v34, %v4516_v14 }
 0x7a5   : > { %2806 = vst.msk [vmem:[%s634_s29] sm:$0xff] %vm656_vm1, %v2805_v54 }
 0x7a6   : > { %3872 = shalt.err (!%p3869_p9)
}
 0x7a7   : > { %s3873_s1 = scalar_lea.hbm %s4706_s13, 128  ;;  %s3877_s22 = scalar_lea.hbm %s4880_s20, 256 }
 0x7a8   : > { %p3874_p6 = scmp.ne.s32.totalorder %s4706_s13, %s3873_s1  ;;  %p3878_p10 = scmp.lt.u32.totalorder %s4706_s13, %s4880_s20 }
 0x7a9   : > { %p3879_p7 = scmp.lt.u32.totalorder %s3877_s22, %s3873_s1  ;;  %p3881_p5 = scmp.lt.u32.totalorder %s3873_s1, %s4706_s13 }
 0x7aa   : > { %p3875_p3 = pnand %p3874_p6, %p4881_p8 }
 0x7ab   : > { %p3880_p4 = por %p3879_p7, %p3878_p10 }
 0x7ac   : > { %p3876_p2 = pneg %p3875_p3 }
 0x7ad   : > { %p3882_p12 = por %p3881_p5, %p3880_p4 }
 0x7af   : > { %p3883_p11 = pnand %p3882_p12, %p3876_p2 }
 0x7b1   : > { %3886 = shalt.err (!%p3883_p11)
}
 0x7b2   : > { %3469 = dma.vmem_to_hbm [thread:$0]  (%p4881_p8), %s4708_s18, 128, %s4706_s13, %s2825_s10   ;;  %v2813_v14 = vpop.permute.xlu1 %2812  ;;  %v2819_v18 = vsel %vm901_vm2, %v4636_v26, %v2809_v50 }
 0x7b3   : > { %s641_s27 = scalar_lea.vmem [#allocation18], %s4471_s7  ;;  %v2820_v55 = vsel %vm2801_vm4, %v2819_v18, %v2813_v14  ;;  %s4882_s15 = sld [smem:[#allocation42_spill]] }
 0x7b4   : > { %s2858_s29 = sshll.u32 %s641_s27, 4  ;;  %s2830_s7 = scalar_lea.sflag [#allocation19], %s4468_s30  ;;  %s4746_s29 = int_to_ptr.vmem [resolvable:$true] %s2858_s29 }
 0x7b5   : > { %s3887_s18 = scalar_lea.vmem %s4746_s29, 128  ;;  %s4016_s13 = smov [#allocation18]  }
 0x7b6   : > { %v2817_v56 = vpop.permute.xlu1 %2816  ;;  %p3888_p13 = scmp.ne.s32.totalorder %s4746_s29, %s3887_s18  ;;  %s3891_s16 = sshll.u32 %s4016_s13, 4  ;;  %s3892_s16 = int_to_ptr.vmem [resolvable:$false] %s3891_s16 }
 0x7b7   : > { %v2821_v57 = vsel %vm2803_vm5, %v2820_v55, %v2817_v56  ;;  %s3893_s10 = scalar_lea.vmem %s3892_s16, 256  ;;  %p3894_p9 = scmp.lt.s32.totalorder %s4746_s29, %s3892_s16 }
 0x7b8   : > { %v2822_v58 = vadd.f32 %v2821_v57, %v4530_v22  ;;  %p3889_p1 = pnand %p3888_p13, %p4881_p8  ;;  %p3895_p6 = scmp.lt.s32.totalorder %s3893_s10, %s3887_s18 }
 0x7b9   : > { %s4883_s28 = smov %s4882_s15  ;;  %s4744_s6 = scalar_lea.hbm %s4882_s15, %s3185_s12 }
 0x7ba   : > { %2823 = vst.msk [vmem:[%s641_s27] sm:$0xff] %vm656_vm1, %v2822_v58  ;;  %p3890_p0 = pneg %p3889_p1  ;;  %p3896_p3 = por %p3895_p6, %p3894_p9 }
 0x7bc   : > { %p3897_p2 = pnand %p3896_p3, %p3890_p0 }
 0x7be   : > { %3900 = shalt.err (!%p3897_p2)
}
 0x7bf   : > { %s3901_s30 = scalar_lea.hbm %s4744_s6, 128  ;;  %s3905_s24 = scalar_lea.hbm %s4883_s28, 256 }
 0x7c0   : > { %p3902_p10 = scmp.ne.s32.totalorder %s4744_s6, %s3901_s30  ;;  %p3906_p5 = scmp.lt.u32.totalorder %s4744_s6, %s4883_s28 }
 0x7c1   : > { %p3907_p12 = scmp.lt.u32.totalorder %s3905_s24, %s3901_s30  ;;  %p3909_p13 = scmp.lt.u32.totalorder %s3901_s30, %s4744_s6 }
 0x7c2   : > { %p3903_p7 = pnand %p3902_p10, %p4881_p8 }
 0x7c3   : > { %p3908_p11 = por %p3907_p12, %p3906_p5 }
 0x7c4   : > { %p3904_p4 = pneg %p3903_p7 }
 0x7c5   : > { %p3910_p1 = por %p3909_p13, %p3908_p11 }
 0x7c7   : > { %p3911_p0 = pnand %p3910_p1, %p3904_p4 }
 0x7c9   : > { %3914 = shalt.err (!%p3911_p0)
}
 0x7ca   : > { %3470 = dma.vmem_to_hbm [thread:$0]  (%p4881_p8), %s4746_s29, 128, %s4744_s6, %s2830_s7  }
 0x7cb PF: > { %s4884_s19 = sld [smem:[#allocation28_spill]]  ;;  %s4885_s22 = sld [smem:[#allocation33_spill]] }
 0x7cc   : > { %s4886_s25 = sld [smem:[#allocation31_spill]] }
 0x7d1   : > { %s2870_s11 = sand.u32 1, %s4884_s19   ;;  %p4887_p9 = scmp.ne.s32.totalorder %s4885_s22, 0 }
 0x7d2   : > { %p4888_p6 = scmp.ge.s32.totalorder %s4886_s25, 2  ;;  %s2871_s27 = scalar_lea.sflag [#allocation4], %s2870_s11 }
 0x7d4   : > { %p3503_p3 = pnand %p4888_p6, %p4887_p9 }
 0x7d6   : > { %3964 = dma.done.wait (!%p3503_p3), %s2871_s27, 128  }
 0x7d7   : > { %3966 = vsyncadd (!%p3503_p3), %s2871_s27, 4294967168  ;;  %s2880_s9 = scalar_lea.sflag [#allocation19], %s2870_s11 }
 0x7d8   : > { %3968 = dma.done.wait (!%p3503_p3), %s2880_s9, 128  }
 0x7d9   : > { %3970 = vsyncadd (!%p3503_p3), %s2880_s9, 4294967168  ;;  %s40_s18 = sadd.s32 1, %s4886_s25   ;;  %s4889_s26 = sld [smem:[#allocation29_spill]] }
 0x7da   : > { %p37_p2 = scmp.ge.s32.totalorder %s40_s18, 4   ;;  %s4890_s15 = sld [smem:[#allocation36_spill]] }
 0x7db   : > { %s4891_s29 = sld [smem:[#allocation34_spill]]  ;;  %s4892_s13 = smov %s3977_s14 }
 0x7dc   : > { %s4894_s16 = smov %s3989_s17  ;;  %39 = sbr.rel (!%p37_p2) target bundleno = 22 (0x16), region = 191 }
 0x7df   : > { %s4893_s14 = smov %s4889_s26 }
 0x7e1   : > { %s4895_s17 = smov %s4891_s29 }
 0x7e3   :  { %2885 = vsyncpa [#allocation3], 1 }
 0x7e4   :  { %2887 = vsyncpa [#allocation3 + $0x1], 1 }
 0x7e5   :  { %2888 = vsyncpa [#allocation6], 1 }
 0x7e6   :  { %2890 = vsyncpa [#allocation6 + $0x1], 1 }
 0x7e7   :  { %2891 = vsyncpa [#allocation9], 1 }
 0x7e8   :  { %2893 = vsyncpa [#allocation9 + $0x1], 1 }
 0x7e9   :  { %2894 = vsyncpa [#allocation12], 1 }
 0x7ea   :  { %2896 = vsyncpa [#allocation12 + $0x1], 1 }
 0x7eb   :  { %2897 = vsyncpa [#allocation15], 1 }
 0x7ec   :  { %2898 = vsyncpa [#allocation4], 1 }
 0x7ed   :  { %2900 = vsyncpa [#allocation4 + $0x1], 1 }
 0x7ee   :  { %2901 = vsyncpa [#allocation19], 1 }
 0x7ef   :  { %2903 = vsyncpa [#allocation19 + $0x1], 1 }

</bundles_post_ra>
